<compile_context>
chip_gen: v7x
topology: tpu7x:2x2x1
jax: 0.10.0
libtpu: 0.0.40
codegen_flags: <defaults>
</compile_context>

<pallas_src>
from functools import partial

import numpy as np
import jax
import jax.numpy as jnp
from jax.experimental import pallas as pl
from jax.experimental.pallas import tpu as pltpu

EPS = 1e-5      # nn.BatchNorm2d default eps
LANE = 128      # TPU lane width


def _round_up(v, m):
    return (v + m - 1) // m * m


# --------------------------------------------------------------------------- #
# Pallas kernel: one (image, row-tile) per grid step, whole bottleneck fused.
# --------------------------------------------------------------------------- #
def _bottleneck_kernel(x_ref, xt_ref, xb_ref,
                       w1_ref, b1_ref, w2_ref, b2_ref, w3_ref, b3_ref,
                       o_ref):
    _, th, wimg, cin = x_ref.shape        # lane-padded in-channels
    cm = w1_ref.shape[1]                  # lane-padded bottleneck width
    cout = w3_ref.shape[1]                # lane-padded output channels (== cin)
    m = th * wimg                         # output pixels in this row tile
    pe = (th + 2) * wimg                  # + one halo row above and below

    h = pl.program_id(1)
    last_h = pl.num_programs(1) - 1

    # ---- assemble row tile + halo rows (bf16) -------------------------------
    xm = x_ref[...].reshape(m, cin)
    x_ext = jnp.concatenate(
        [xt_ref[...].reshape(wimg, cin), xm, xb_ref[...].reshape(wimg, cin)],
        axis=0)                                               # (pe, cin) bf16

    # ---- conv1 (1x1, BN1 scale folded into w1) + bias + relu ----------------
    h1 = jnp.dot(x_ext, w1_ref[...], preferred_element_type=jnp.float32)
    h1 = jnp.maximum(h1 + b1_ref[...], 0.0)
    # Halo rows that fall outside the image must behave as conv2 zero padding
    # (the wrapper clamps their row index, so the data there is garbage).
    row = jax.lax.broadcasted_iota(jnp.int32, (pe, 1), 0)
    valid = jnp.logical_and(jnp.logical_or(row >= wimg, h > 0),
                            jnp.logical_or(row < (th + 1) * wimg, h < last_h))
    h1 = jnp.where(valid, h1, 0.0)

    # ---- conv2 (3x3, stride 1, pad 1): 9 shifted matmuls, f32 accumulate ----
    # Column (x) shifts via pltpu.roll (equivalent to jnp.roll(h1, -1/+1, 0))
    # plus a column-boundary mask; row (y) shifts are static sublane-aligned
    # slices of the halo-extended activations.
    col = row % wimg
    h1_xp = jnp.where(col < wimg - 1, pltpu.roll(h1, pe - 1, 0), 0.0)  # x + 1
    h1_xm = jnp.where(col > 0, pltpu.roll(h1, 1, 0), 0.0)              # x - 1
    src = {-1: h1_xm.astype(jnp.bfloat16),
           0: h1.astype(jnp.bfloat16),
           1: h1_xp.astype(jnp.bfloat16)}

    acc = jnp.zeros((m, cm), jnp.float32)
    tap = 0
    for dy in (-1, 0, 1):
        r0 = (dy + 1) * wimg              # static, multiple of wimg (aligned)
        for dx in (-1, 0, 1):
            acc = acc + jnp.dot(src[dx][r0:r0 + m, :], w2_ref[tap],
                                preferred_element_type=jnp.float32)
            tap += 1
    h2 = jnp.maximum(acc + b2_ref[...], 0.0)

    # ---- conv3 (1x1, BN3 scale folded into w3) + bias + relu ----------------
    h3 = jnp.dot(h2.astype(jnp.bfloat16), w3_ref[...],
                 preferred_element_type=jnp.float32)
    h3 = jnp.maximum(h3 + b3_ref[...], 0.0)

    # ---- residual add (identity path) + final relu --------------------------
    out = jnp.maximum(h3 + xm.astype(jnp.float32), 0.0)
    o_ref[...] = out.reshape(1, th, wimg, cout).astype(o_ref.dtype)


# --------------------------------------------------------------------------- #
# pallas_call wrapper (NHWC, lane-padded channels, bf16 activations)
# --------------------------------------------------------------------------- #
def _pick_row_tile(n, h_img, w_img):
    """Largest row tile (multiple of 8 dividing H) that gives >= 4 total grid
    steps (>= 2 per TensorCore on megacore parts) and keeps per-step pixel
    count bounded; falls back to the whole image."""
    if h_img % 8 != 0:
        return h_img
    cands = [t for t in range(8, h_img + 1, 8) if h_img % t == 0]
    good = [t for t in cands if n * (h_img // t) >= 4 and t * w_img <= 4096]
    if good:
        return max(good)
    small = [t for t in cands if t * w_img <= 4096]
    return max(small) if small else 8


def _vmem_limit_bytes(th, w_img, cin_p, cm_p, cout_p):
    f32b, bf16b = 4, 2
    m, pe = th * w_img, (th + 2) * w_img
    # double-buffered activation tiles (input row tile + 2 halo rows + output)
    act = 2 * ((m + 2 * w_img) * cin_p + m * cout_p) * bf16b
    # weights / biases are grid-resident (constant index_map): counted once
    wts = ((cin_p * cm_p) + 9 * cm_p * cm_p + cm_p * cout_p) * bf16b \
        + (2 * cm_p + cout_p) * f32b
    # in-kernel intermediates: h1 + 2 column-shifted copies (f32 + bf16 casts),
    # plus acc / h2 / h3 in f32
    tmp = 3 * pe * cm_p * (f32b + bf16b) + 3 * m * max(cm_p, cout_p) * f32b
    est = act + wts + 3 * tmp            # 3x headroom for Mosaic relayout temps
    try:
        cap = int(pltpu.get_tpu_info().vmem_capacity_bytes)
    except Exception:                     # older jax / no TPU query available
        cap = 64 * 1024 * 1024            # assume the smallest (v7x-class) VMEM
    return int(min(max(est, 8 * 1024 * 1024), (3 * cap) // 4))


def _bottleneck_nhwc(x, kp):
    n, h_img, w_img, cin_p = x.shape
    cm_p = kp["w1"].shape[1]
    cout_p = kp["w3"].shape[1]
    th = _pick_row_tile(n, h_img, w_img)
    gh = h_img // th

    def const_spec(shape):
        nd = len(shape)
        return pl.BlockSpec(shape, lambda i, j: (0,) * nd)

    in_specs = [
        # row tile of x (also the residual), plus one halo row above and below
        pl.BlockSpec((1, th, w_img, cin_p), lambda i, j: (i, j, 0, 0)),
        pl.BlockSpec((1, 1, w_img, cin_p),
                     lambda i, j: (i, jnp.maximum(j * th - 1, 0), 0, 0)),
        pl.BlockSpec((1, 1, w_img, cin_p),
                     lambda i, j: (i, jnp.minimum(j * th + th, h_img - 1), 0, 0)),
        const_spec(kp["w1"].shape), const_spec(kp["b1"].shape),
        const_spec(kp["w2"].shape), const_spec(kp["b2"].shape),
        const_spec(kp["w3"].shape), const_spec(kp["b3"].shape),
    ]
    out_specs = pl.BlockSpec((1, th, w_img, cout_p), lambda i, j: (i, j, 0, 0))

    return pl.pallas_call(
        _bottleneck_kernel,
        out_shape=jax.ShapeDtypeStruct((n, h_img, w_img, cout_p), jnp.bfloat16),
        grid_spec=pltpu.PrefetchScalarGridSpec(
            num_scalar_prefetch=0,
            grid=(n, gh),
            in_specs=in_specs,
            out_specs=out_specs,
        ),
        compiler_params=pltpu.CompilerParams(
            dimension_semantics=("parallel", "parallel"),   # megacore split
            vmem_limit_bytes=_vmem_limit_bytes(th, w_img, cin_p, cm_p, cout_p),
        ),
    )(x, x, x, kp["w1"], kp["b1"], kp["w2"], kp["b2"], kp["w3"], kp["b3"])


@partial(jax.jit, static_argnames=("cout",))
def bottleneck_block(x_nchw, kparams, *, cout):
    n, cin, h_img, w_img = x_nchw.shape
    cin_p = kparams["w1"].shape[0]
    cout_p = kparams["w3"].shape[1]
    if cin != cout or cin_p != cout_p:
        raise NotImplementedError(
            "identity residual requires in_channel == out_channel * expansion; "
            "stride > 1 / identity_downsample is not implemented")
    # TODO(synk): when chaining blocks keep NHWC bf16 end-to-end; the transposes
    # and the final f32 cast only exist to match the PyTorch NCHW/f32 interface.
    x = jnp.transpose(x_nchw, (0, 2, 3, 1)).astype(jnp.bfloat16)   # NCHW -> NHWC
    if cin_p != cin:
        x = jnp.pad(x, ((0, 0), (0, 0), (0, 0), (0, cin_p - cin)))
    out = _bottleneck_nhwc(x, kparams)                             # bf16 NHWC
    out = out[..., :cout]
    return jnp.transpose(out, (0, 3, 1, 2)).astype(jnp.float32)    # NHWC -> NCHW


# --------------------------------------------------------------------------- #
# Parameter init (PyTorch-like), BN folding into weights, lane padding, bf16
# --------------------------------------------------------------------------- #
def _fold_bn(gamma, beta, mean, var, conv_bias):
    scale = gamma / jnp.sqrt(var + EPS)
    bias = beta + scale * (conv_bias - mean)
    return scale.reshape(1, -1), bias.reshape(1, -1)


def init_params(key, cin, cmid):
    cout = cmid * 4
    ks = jax.random.split(key, 9)

    def u(k, shape, fan_in):
        bound = 1.0 / np.sqrt(fan_in)
        return jax.random.uniform(k, shape, jnp.float32, -bound, bound)

    # conv weights stored channels-last: 1x1 -> (Cin, Cout); 3x3 -> (9, Cin, Cout)
    w1, cb1 = u(ks[0], (cin, cmid), cin), u(ks[1], (cmid,), cin)
    w2, cb2 = u(ks[2], (9, cmid, cmid), cmid * 9), u(ks[3], (cmid,), cmid * 9)
    w3, cb3 = u(ks[4], (cmid, cout), cmid), u(ks[5], (cout,), cmid)

    def bn_raw(k, c):
        kg, kb, km, kv = jax.random.split(k, 4)
        gamma = jax.random.uniform(kg, (c,), jnp.float32, 0.5, 1.5)
        beta = jax.random.uniform(kb, (c,), jnp.float32, -0.5, 0.5)
        mean = jax.random.uniform(km, (c,), jnp.float32, -0.5, 0.5)
        var = jax.random.uniform(kv, (c,), jnp.float32, 0.5, 1.5)
        return gamma, beta, mean, var

    bn1, bn2, bn3 = bn_raw(ks[6], cmid), bn_raw(ks[7], cmid), bn_raw(ks[8], cout)

    raw = dict(w1=w1, cb1=cb1, w2=w2, cb2=cb2, w3=w3, cb3=cb3,
               bn1=bn1, bn2=bn2, bn3=bn3)
    s1, b1 = _fold_bn(*bn1, cb1)
    s2, b2 = _fold_bn(*bn2, cb2)
    s3, b3 = _fold_bn(*bn3, cb3)
    folded = dict(w1=w1, s1=s1, b1=b1, w2=w2, s2=s2, b2=b2, w3=w3, s3=s3, b3=b3)
    return raw, folded


def pad_and_cast_params(folded, cin, cmid, cout):
    """Fold BN scale into the conv weights (f32, before the bf16 cast), zero-pad
    channel dims to multiples of 128 (lane-dense stores, aligned MXU K/N) and
    cast matmul weights to bf16. Zero pads guarantee padded channels stay
    exactly 0 through every relu, so slicing the output back is exact."""
    cin_p, cm_p, cout_p = (_round_up(cin, LANE), _round_up(cmid, LANE),
                           _round_up(cout, LANE))
    f32 = jnp.float32

    w1f = folded["w1"] * folded["s1"].reshape(1, -1)          # (cin, cmid)
    w2f = folded["w2"] * folded["s2"].reshape(1, 1, -1)       # (9, cmid, cmid)
    w3f = folded["w3"] * folded["s3"].reshape(1, -1)          # (cmid, cout)

    w1 = jnp.zeros((cin_p, cm_p), f32).at[:cin, :cmid].set(w1f)
    w2 = jnp.zeros((9, cm_p, cm_p), f32).at[:, :cmid, :cmid].set(w2f)
    w3 = jnp.zeros((cm_p, cout_p), f32).at[:cmid, :cout].set(w3f)

    def padvec(v, cp):
        return jnp.zeros((1, cp), f32).at[:, :v.shape[1]].set(v)

    return dict(
        w1=w1.astype(jnp.bfloat16), b1=padvec(folded["b1"], cm_p),
        w2=w2.astype(jnp.bfloat16), b2=padvec(folded["b2"], cm_p),
        w3=w3.astype(jnp.bfloat16), b3=padvec(folded["b3"], cout_p),
    )


# --------------------------------------------------------------------------- #
# Pure-JAX reference (unfolded: conv + bias, then explicit BN) for validation
# --------------------------------------------------------------------------- #
def _reference(x_nchw, raw):
    x = jnp.transpose(x_nchw, (0, 2, 3, 1))
    dn = ("NHWC", "HWIO", "NHWC")
    cin, cmid = raw["w1"].shape
    cout = raw["w3"].shape[1]

    def conv(y, w_hwio, b, pad):
        return jax.lax.conv_general_dilated(y, w_hwio, (1, 1), pad,
                                            dimension_numbers=dn) + b

    def bn(y, g, b, m, v):
        return (y - m) / jnp.sqrt(v + EPS) * g + b

    y = conv(x, raw["w1"].reshape(1, 1, cin, cmid), raw["cb1"], "VALID")
    y = jnp.maximum(bn(y, *raw["bn1"]), 0.0)
    y = conv(y, raw["w2"].reshape(3, 3, cmid, cmid), raw["cb2"], ((1, 1), (1, 1)))
    y = jnp.maximum(bn(y, *raw["bn2"]), 0.0)
    y = conv(y, raw["w3"].reshape(1, 1, cmid, cout), raw["cb3"], "VALID")
    y = jnp.maximum(bn(y, *raw["bn3"]), 0.0)
    y = jnp.maximum(y + x, 0.0)
    return jnp.transpose(y, (0, 3, 1, 2))


# --------------------------------------------------------------------------- #
if __name__ == "__main__":
    key = jax.random.PRNGKey(0)
    N, Cin, H, W = 2, 32, 16, 16          # in_channel=32, out_channel=8, expansion=4
    Cmid = Cin // 4
    Cout = Cmid * 4
    assert Cout == Cin, "identity residual requires in_channel == out_channel * 4"

    kx, kp = jax.random.split(key)
    x = jax.random.normal(kx, (N, Cin, H, W), jnp.float32)   # PyTorch-style NCHW

    raw, folded = init_params(kp, Cin, Cmid)
    kparams = pad_and_cast_params(folded, Cin, Cmid, Cout)

    out = jax.block_until_ready(bottleneck_block(x, kparams, cout=Cout))
    ref = _reference(x, raw)

    assert out.shape == (N, Cout, H, W)
    # Tolerance accounts for bf16 matmul operands plus bf16 input/output
    # activations (reference is pure f32).
    np.testing.assert_allclose(np.asarray(out), np.asarray(ref),
                               rtol=5e-2, atol=1e-1)
    print("KERNEL_OK")
</pallas_src>

<mosaic_0001>
module attributes {stable_mosaic.version = 11 : i64} {
  func.func @_bottleneck_kernel(%arg0: i32, %arg1: i32, %arg2: memref<1x8x16x128xbf16, #tpu.memory_space<vmem>>, %arg3: memref<1x1x16x128xbf16, #tpu.memory_space<vmem>>, %arg4: memref<1x1x16x128xbf16, #tpu.memory_space<vmem>>, %arg5: memref<128x128xbf16, #tpu.memory_space<vmem>>, %arg6: memref<1x128xf32, #tpu.memory_space<vmem>>, %arg7: memref<9x128x128xbf16, #tpu.memory_space<vmem>>, %arg8: memref<1x128xf32, #tpu.memory_space<vmem>>, %arg9: memref<128x128xbf16, #tpu.memory_space<vmem>>, %arg10: memref<1x128xf32, #tpu.memory_space<vmem>>, %arg11: memref<1x8x16x128xbf16, #tpu.memory_space<vmem>>) attributes {dimension_semantics = [#tpu.dimension_semantics<parallel>, #tpu.dimension_semantics<parallel>], iteration_bounds = array<i64: 2, 2>, scalar_prefetch = 0 : i64, scratch_operands = 0 : i64, tpu.core_type = #tpu.core_type<tc>, window_params = [{transform_indices = @transform_0, window_bounds = array<i64: 1, 8, 16, 128>}, {transform_indices = @transform_1, window_bounds = array<i64: 1, 1, 16, 128>}, {transform_indices = @transform_2, window_bounds = array<i64: 1, 1, 16, 128>}, {pipeline_mode = #tpu.pipeline_mode<synchronous>, transform_indices = @transform_3, window_bounds = array<i64: 128, 128>}, {pipeline_mode = #tpu.pipeline_mode<synchronous>, transform_indices = @transform_4, window_bounds = array<i64: 1, 128>}, {pipeline_mode = #tpu.pipeline_mode<synchronous>, transform_indices = @transform_5, window_bounds = array<i64: 9, 128, 128>}, {pipeline_mode = #tpu.pipeline_mode<synchronous>, transform_indices = @transform_6, window_bounds = array<i64: 1, 128>}, {pipeline_mode = #tpu.pipeline_mode<synchronous>, transform_indices = @transform_7, window_bounds = array<i64: 128, 128>}, {pipeline_mode = #tpu.pipeline_mode<synchronous>, transform_indices = @transform_8, window_bounds = array<i64: 1, 128>}, {transform_indices = @transform_9, window_bounds = array<i64: 1, 8, 16, 128>}]} {
    %c0 = arith.constant 0 : index
    %c0_0 = arith.constant 0 : index
    %c0_1 = arith.constant 0 : index
    %c0_2 = arith.constant 0 : index
    %0 = vector.load %arg2[%c0, %c0_0, %c0_1, %c0_2] : memref<1x8x16x128xbf16, #tpu.memory_space<vmem>>, vector<1x8x16x128xbf16>
    %1 = vector.shape_cast %0 : vector<1x8x16x128xbf16> to vector<128x128xbf16>
    %c0_3 = arith.constant 0 : index
    %c0_4 = arith.constant 0 : index
    %c0_5 = arith.constant 0 : index
    %c0_6 = arith.constant 0 : index
    %2 = vector.load %arg3[%c0_3, %c0_4, %c0_5, %c0_6] : memref<1x1x16x128xbf16, #tpu.memory_space<vmem>>, vector<1x1x16x128xbf16>
    %3 = vector.shape_cast %2 : vector<1x1x16x128xbf16> to vector<16x128xbf16>
    %c0_7 = arith.constant 0 : index
    %c0_8 = arith.constant 0 : index
    %c0_9 = arith.constant 0 : index
    %c0_10 = arith.constant 0 : index
    %4 = vector.load %arg4[%c0_7, %c0_8, %c0_9, %c0_10] : memref<1x1x16x128xbf16, #tpu.memory_space<vmem>>, vector<1x1x16x128xbf16>
    %5 = vector.shape_cast %4 : vector<1x1x16x128xbf16> to vector<16x128xbf16>
    %6 = tpu.concatenate %3, %1, %5 in 0 : vector<16x128xbf16>, vector<128x128xbf16>, vector<16x128xbf16> -> vector<160x128xbf16>
    %c0_11 = arith.constant 0 : index
    %c0_12 = arith.constant 0 : index
    %7 = vector.load %arg5[%c0_11, %c0_12] : memref<128x128xbf16, #tpu.memory_space<vmem>>, vector<128x128xbf16>
    %cst = arith.constant dense<0.000000e+00> : vector<160x128xf32>
    %8 = tpu.matmul %6, %7, %cst {dimension_numbers = #tpu.dot_dimension_numbers<[1], [0], [0], [1], [0, 0, 1, 1], [], []>} : vector<160x128xbf16>, vector<128x128xbf16>, vector<160x128xf32> -> vector<160x128xf32>
    %c0_13 = arith.constant 0 : index
    %c0_14 = arith.constant 0 : index
    %9 = vector.load %arg6[%c0_13, %c0_14] : memref<1x128xf32, #tpu.memory_space<vmem>>, vector<1x128xf32>
    %10 = vector.broadcast %9 : vector<1x128xf32> to vector<160x128xf32>
    %11 = arith.addf %8, %10 : vector<160x128xf32>
    %cst_15 = arith.constant 0.000000e+00 : f32
    %12 = vector.broadcast %cst_15 : f32 to vector<160x128xf32>
    %13 = arith.maximumf %11, %12 : vector<160x128xf32>
    %14 = tpu.iota {dimensions = array<i32: 0>} : vector<160x1xi32>
    %c16_i32 = arith.constant 16 : i32
    %15 = vector.broadcast %c16_i32 : i32 to vector<160x1xi32>
    %16 = arith.cmpi sge, %14, %15 : vector<160x1xi32>
    %c0_i32 = arith.constant 0 : i32
    %17 = arith.cmpi sgt, %arg1, %c0_i32 : i32
    %18 = vector.broadcast %17 : i1 to vector<160x1xi1>
    %19 = arith.ori %16, %18 : vector<160x1xi1>
    %c144_i32 = arith.constant 144 : i32
    %20 = vector.broadcast %c144_i32 : i32 to vector<160x1xi32>
    %21 = arith.cmpi slt, %14, %20 : vector<160x1xi32>
    %c1_i32 = arith.constant 1 : i32
    %22 = arith.cmpi slt, %arg1, %c1_i32 : i32
    %23 = vector.broadcast %22 : i1 to vector<160x1xi1>
    %24 = arith.ori %21, %23 : vector<160x1xi1>
    %25 = arith.andi %19, %24 : vector<160x1xi1>
    %cst_16 = arith.constant 0.000000e+00 : f32
    %26 = vector.shape_cast %25 : vector<160x1xi1> to vector<160x1xi1>
    %27 = vector.broadcast %26 : vector<160x1xi1> to vector<160x128xi1>
    %28 = vector.broadcast %cst_16 : f32 to vector<160x128xf32>
    %29 = arith.select %27, %13, %28 : vector<160x128xi1>, vector<160x128xf32>
    %c16_i32_17 = arith.constant 16 : i32
    %c0_i32_18 = arith.constant 0 : i32
    %30 = arith.cmpi eq, %c16_i32_17, %c0_i32_18 : i32
    %c1_i32_19 = arith.constant 1 : i32
    %31 = arith.select %30, %c1_i32_19, %c16_i32_17 : i32
    %32 = vector.broadcast %31 : i32 to vector<160x1xi32>
    %33 = arith.remsi %14, %32 : vector<160x1xi32>
    %c0_i32_20 = arith.constant 0 : i32
    %34 = vector.broadcast %c0_i32_20 : i32 to vector<160x1xi32>
    %35 = arith.cmpi ne, %33, %34 : vector<160x1xi32>
    %c0_i32_21 = arith.constant 0 : i32
    %36 = vector.broadcast %c0_i32_21 : i32 to vector<160x1xi32>
    %37 = arith.cmpi slt, %33, %36 : vector<160x1xi32>
    %c0_i32_22 = arith.constant 0 : i32
    %38 = arith.cmpi slt, %31, %c0_i32_22 : i32
    %39 = vector.broadcast %38 : i1 to vector<160x1xi1>
    %40 = vector.broadcast %39 : vector<160x1xi1> to vector<160x1xi1>
    %41 = arith.xori %37, %40 : vector<160x1xi1>
    %42 = arith.andi %41, %35 : vector<160x1xi1>
    %43 = vector.broadcast %31 : i32 to vector<160x1xi32>
    %44 = arith.addi %33, %43 : vector<160x1xi32>
    %45 = arith.select %42, %44, %33 : vector<160x1xi1>, vector<160x1xi32>
    %c15_i32 = arith.constant 15 : i32
    %46 = vector.broadcast %c15_i32 : i32 to vector<160x1xi32>
    %47 = arith.cmpi slt, %45, %46 : vector<160x1xi32>
    %c159_i32 = arith.constant 159 : i32
    %48 = tpu.dynamic_rotate %29 by %c159_i32 dim 0 : vector<160x128xf32>, i32 -> vector<160x128xf32>
    %cst_23 = arith.constant 0.000000e+00 : f32
    %49 = vector.shape_cast %47 : vector<160x1xi1> to vector<160x1xi1>
    %50 = vector.broadcast %49 : vector<160x1xi1> to vector<160x128xi1>
    %51 = vector.broadcast %cst_23 : f32 to vector<160x128xf32>
    %52 = arith.select %50, %48, %51 : vector<160x128xi1>, vector<160x128xf32>
    %c0_i32_24 = arith.constant 0 : i32
    %53 = vector.broadcast %c0_i32_24 : i32 to vector<160x1xi32>
    %54 = arith.cmpi sgt, %45, %53 : vector<160x1xi32>
    %c1_i32_25 = arith.constant 1 : i32
    %55 = tpu.dynamic_rotate %29 by %c1_i32_25 dim 0 : vector<160x128xf32>, i32 -> vector<160x128xf32>
    %cst_26 = arith.constant 0.000000e+00 : f32
    %56 = vector.shape_cast %54 : vector<160x1xi1> to vector<160x1xi1>
    %57 = vector.broadcast %56 : vector<160x1xi1> to vector<160x128xi1>
    %58 = vector.broadcast %cst_26 : f32 to vector<160x128xf32>
    %59 = arith.select %57, %55, %58 : vector<160x128xi1>, vector<160x128xf32>
    %60 = arith.truncf %59 : vector<160x128xf32> to vector<160x128xbf16>
    %61 = arith.truncf %29 : vector<160x128xf32> to vector<160x128xbf16>
    %62 = arith.truncf %52 : vector<160x128xf32> to vector<160x128xbf16>
    %cst_27 = arith.constant 0.000000e+00 : f32
    %63 = vector.broadcast %cst_27 : f32 to vector<128x128xf32>
    %64 = vector.extract_strided_slice %60 {offsets = [0, 0], sizes = [128, 128], strides = [1, 1]} : vector<160x128xbf16> to vector<128x128xbf16>
    %c0_28 = arith.constant 0 : index
    %c0_29 = arith.constant 0 : index
    %c0_30 = arith.constant 0 : index
    %65 = vector.load %arg7[%c0_28, %c0_29, %c0_30] : memref<9x128x128xbf16, #tpu.memory_space<vmem>>, vector<1x128x128xbf16>
    %66 = vector.shape_cast %65 : vector<1x128x128xbf16> to vector<128x128xbf16>
    %cst_31 = arith.constant dense<0.000000e+00> : vector<128x128xf32>
    %67 = tpu.matmul %64, %66, %cst_31 {dimension_numbers = #tpu.dot_dimension_numbers<[1], [0], [0], [1], [0, 0, 1, 1], [], []>} : vector<128x128xbf16>, vector<128x128xbf16>, vector<128x128xf32> -> vector<128x128xf32>
    %68 = arith.addf %63, %67 : vector<128x128xf32>
    %69 = vector.extract_strided_slice %61 {offsets = [0, 0], sizes = [128, 128], strides = [1, 1]} : vector<160x128xbf16> to vector<128x128xbf16>
    %c1 = arith.constant 1 : index
    %c0_32 = arith.constant 0 : index
    %c0_33 = arith.constant 0 : index
    %70 = vector.load %arg7[%c1, %c0_32, %c0_33] : memref<9x128x128xbf16, #tpu.memory_space<vmem>>, vector<1x128x128xbf16>
    %71 = vector.shape_cast %70 : vector<1x128x128xbf16> to vector<128x128xbf16>
    %cst_34 = arith.constant dense<0.000000e+00> : vector<128x128xf32>
    %72 = tpu.matmul %69, %71, %cst_34 {dimension_numbers = #tpu.dot_dimension_numbers<[1], [0], [0], [1], [0, 0, 1, 1], [], []>} : vector<128x128xbf16>, vector<128x128xbf16>, vector<128x128xf32> -> vector<128x128xf32>
    %73 = arith.addf %68, %72 : vector<128x128xf32>
    %74 = vector.extract_strided_slice %62 {offsets = [0, 0], sizes = [128, 128], strides = [1, 1]} : vector<160x128xbf16> to vector<128x128xbf16>
    %c2 = arith.constant 2 : index
    %c0_35 = arith.constant 0 : index
    %c0_36 = arith.constant 0 : index
    %75 = vector.load %arg7[%c2, %c0_35, %c0_36] : memref<9x128x128xbf16, #tpu.memory_space<vmem>>, vector<1x128x128xbf16>
    %76 = vector.shape_cast %75 : vector<1x128x128xbf16> to vector<128x128xbf16>
    %cst_37 = arith.constant dense<0.000000e+00> : vector<128x128xf32>
    %77 = tpu.matmul %74, %76, %cst_37 {dimension_numbers = #tpu.dot_dimension_numbers<[1], [0], [0], [1], [0, 0, 1, 1], [], []>} : vector<128x128xbf16>, vector<128x128xbf16>, vector<128x128xf32> -> vector<128x128xf32>
    %78 = arith.addf %73, %77 : vector<128x128xf32>
    %79 = vector.extract_strided_slice %60 {offsets = [16, 0], sizes = [128, 128], strides = [1, 1]} : vector<160x128xbf16> to vector<128x128xbf16>
    %c3 = arith.constant 3 : index
    %c0_38 = arith.constant 0 : index
    %c0_39 = arith.constant 0 : index
    %80 = vector.load %arg7[%c3, %c0_38, %c0_39] : memref<9x128x128xbf16, #tpu.memory_space<vmem>>, vector<1x128x128xbf16>
    %81 = vector.shape_cast %80 : vector<1x128x128xbf16> to vector<128x128xbf16>
    %cst_40 = arith.constant dense<0.000000e+00> : vector<128x128xf32>
    %82 = tpu.matmul %79, %81, %cst_40 {dimension_numbers = #tpu.dot_dimension_numbers<[1], [0], [0], [1], [0, 0, 1, 1], [], []>} : vector<128x128xbf16>, vector<128x128xbf16>, vector<128x128xf32> -> vector<128x128xf32>
    %83 = arith.addf %78, %82 : vector<128x128xf32>
    %84 = vector.extract_strided_slice %61 {offsets = [16, 0], sizes = [128, 128], strides = [1, 1]} : vector<160x128xbf16> to vector<128x128xbf16>
    %c4 = arith.constant 4 : index
    %c0_41 = arith.constant 0 : index
    %c0_42 = arith.constant 0 : index
    %85 = vector.load %arg7[%c4, %c0_41, %c0_42] : memref<9x128x128xbf16, #tpu.memory_space<vmem>>, vector<1x128x128xbf16>
    %86 = vector.shape_cast %85 : vector<1x128x128xbf16> to vector<128x128xbf16>
    %cst_43 = arith.constant dense<0.000000e+00> : vector<128x128xf32>
    %87 = tpu.matmul %84, %86, %cst_43 {dimension_numbers = #tpu.dot_dimension_numbers<[1], [0], [0], [1], [0, 0, 1, 1], [], []>} : vector<128x128xbf16>, vector<128x128xbf16>, vector<128x128xf32> -> vector<128x128xf32>
    %88 = arith.addf %83, %87 : vector<128x128xf32>
    %89 = vector.extract_strided_slice %62 {offsets = [16, 0], sizes = [128, 128], strides = [1, 1]} : vector<160x128xbf16> to vector<128x128xbf16>
    %c5 = arith.constant 5 : index
    %c0_44 = arith.constant 0 : index
    %c0_45 = arith.constant 0 : index
    %90 = vector.load %arg7[%c5, %c0_44, %c0_45] : memref<9x128x128xbf16, #tpu.memory_space<vmem>>, vector<1x128x128xbf16>
    %91 = vector.shape_cast %90 : vector<1x128x128xbf16> to vector<128x128xbf16>
    %cst_46 = arith.constant dense<0.000000e+00> : vector<128x128xf32>
    %92 = tpu.matmul %89, %91, %cst_46 {dimension_numbers = #tpu.dot_dimension_numbers<[1], [0], [0], [1], [0, 0, 1, 1], [], []>} : vector<128x128xbf16>, vector<128x128xbf16>, vector<128x128xf32> -> vector<128x128xf32>
    %93 = arith.addf %88, %92 : vector<128x128xf32>
    %94 = vector.extract_strided_slice %60 {offsets = [32, 0], sizes = [128, 128], strides = [1, 1]} : vector<160x128xbf16> to vector<128x128xbf16>
    %c6 = arith.constant 6 : index
    %c0_47 = arith.constant 0 : index
    %c0_48 = arith.constant 0 : index
    %95 = vector.load %arg7[%c6, %c0_47, %c0_48] : memref<9x128x128xbf16, #tpu.memory_space<vmem>>, vector<1x128x128xbf16>
    %96 = vector.shape_cast %95 : vector<1x128x128xbf16> to vector<128x128xbf16>
    %cst_49 = arith.constant dense<0.000000e+00> : vector<128x128xf32>
    %97 = tpu.matmul %94, %96, %cst_49 {dimension_numbers = #tpu.dot_dimension_numbers<[1], [0], [0], [1], [0, 0, 1, 1], [], []>} : vector<128x128xbf16>, vector<128x128xbf16>, vector<128x128xf32> -> vector<128x128xf32>
    %98 = arith.addf %93, %97 : vector<128x128xf32>
    %99 = vector.extract_strided_slice %61 {offsets = [32, 0], sizes = [128, 128], strides = [1, 1]} : vector<160x128xbf16> to vector<128x128xbf16>
    %c7 = arith.constant 7 : index
    %c0_50 = arith.constant 0 : index
    %c0_51 = arith.constant 0 : index
    %100 = vector.load %arg7[%c7, %c0_50, %c0_51] : memref<9x128x128xbf16, #tpu.memory_space<vmem>>, vector<1x128x128xbf16>
    %101 = vector.shape_cast %100 : vector<1x128x128xbf16> to vector<128x128xbf16>
    %cst_52 = arith.constant dense<0.000000e+00> : vector<128x128xf32>
    %102 = tpu.matmul %99, %101, %cst_52 {dimension_numbers = #tpu.dot_dimension_numbers<[1], [0], [0], [1], [0, 0, 1, 1], [], []>} : vector<128x128xbf16>, vector<128x128xbf16>, vector<128x128xf32> -> vector<128x128xf32>
    %103 = arith.addf %98, %102 : vector<128x128xf32>
    %104 = vector.extract_strided_slice %62 {offsets = [32, 0], sizes = [128, 128], strides = [1, 1]} : vector<160x128xbf16> to vector<128x128xbf16>
    %c8 = arith.constant 8 : index
    %c0_53 = arith.constant 0 : index
    %c0_54 = arith.constant 0 : index
    %105 = vector.load %arg7[%c8, %c0_53, %c0_54] : memref<9x128x128xbf16, #tpu.memory_space<vmem>>, vector<1x128x128xbf16>
    %106 = vector.shape_cast %105 : vector<1x128x128xbf16> to vector<128x128xbf16>
    %cst_55 = arith.constant dense<0.000000e+00> : vector<128x128xf32>
    %107 = tpu.matmul %104, %106, %cst_55 {dimension_numbers = #tpu.dot_dimension_numbers<[1], [0], [0], [1], [0, 0, 1, 1], [], []>} : vector<128x128xbf16>, vector<128x128xbf16>, vector<128x128xf32> -> vector<128x128xf32>
    %108 = arith.addf %103, %107 : vector<128x128xf32>
    %c0_56 = arith.constant 0 : index
    %c0_57 = arith.constant 0 : index
    %109 = vector.load %arg8[%c0_56, %c0_57] : memref<1x128xf32, #tpu.memory_space<vmem>>, vector<1x128xf32>
    %110 = vector.broadcast %109 : vector<1x128xf32> to vector<128x128xf32>
    %111 = arith.addf %108, %110 : vector<128x128xf32>
    %cst_58 = arith.constant 0.000000e+00 : f32
    %112 = vector.broadcast %cst_58 : f32 to vector<128x128xf32>
    %113 = arith.maximumf %111, %112 : vector<128x128xf32>
    %114 = arith.truncf %113 : vector<128x128xf32> to vector<128x128xbf16>
    %c0_59 = arith.constant 0 : index
    %c0_60 = arith.constant 0 : index
    %115 = vector.load %arg9[%c0_59, %c0_60] : memref<128x128xbf16, #tpu.memory_space<vmem>>, vector<128x128xbf16>
    %cst_61 = arith.constant dense<0.000000e+00> : vector<128x128xf32>
    %116 = tpu.matmul %114, %115, %cst_61 {dimension_numbers = #tpu.dot_dimension_numbers<[1], [0], [0], [1], [0, 0, 1, 1], [], []>} : vector<128x128xbf16>, vector<128x128xbf16>, vector<128x128xf32> -> vector<128x128xf32>
    %c0_62 = arith.constant 0 : index
    %c0_63 = arith.constant 0 : index
    %117 = vector.load %arg10[%c0_62, %c0_63] : memref<1x128xf32, #tpu.memory_space<vmem>>, vector<1x128xf32>
    %118 = vector.broadcast %117 : vector<1x128xf32> to vector<128x128xf32>
    %119 = arith.addf %116, %118 : vector<128x128xf32>
    %cst_64 = arith.constant 0.000000e+00 : f32
    %120 = vector.broadcast %cst_64 : f32 to vector<128x128xf32>
    %121 = arith.maximumf %119, %120 : vector<128x128xf32>
    %122 = arith.extf %1 : vector<128x128xbf16> to vector<128x128xf32>
    %123 = arith.addf %121, %122 : vector<128x128xf32>
    %cst_65 = arith.constant 0.000000e+00 : f32
    %124 = vector.broadcast %cst_65 : f32 to vector<128x128xf32>
    %125 = arith.maximumf %123, %124 : vector<128x128xf32>
    %126 = vector.shape_cast %125 : vector<128x128xf32> to vector<1x8x16x128xf32>
    %127 = arith.truncf %126 : vector<1x8x16x128xf32> to vector<1x8x16x128xbf16>
    %c0_66 = arith.constant 0 : index
    %c0_67 = arith.constant 0 : index
    %c0_68 = arith.constant 0 : index
    %c0_69 = arith.constant 0 : index
    %128 = vector.load %arg11[%c0_66, %c0_67, %c0_68, %c0_69] : memref<1x8x16x128xbf16, #tpu.memory_space<vmem>>, vector<1x8x16x128xbf16>
    tpu.vector_store %arg11[%c0_66, %c0_67, %c0_68, %c0_69], %127 {strides = array<i32>} : memref<1x8x16x128xbf16, #tpu.memory_space<vmem>>, vector<1x8x16x128xbf16>,
    return
  }
  func.func @transform_0(%arg0: i32, %arg1: i32) -> (i32, i32, i32, i32) {
    %c0_i32 = arith.constant 0 : i32
    %c0_i32_0 = arith.constant 0 : i32
    %c0_i32_1 = arith.constant 0 : i32
    return %arg0, %arg1, %c0_i32, %c0_i32_0 : i32, i32, i32, i32
  }
  func.func @transform_1(%arg0: i32, %arg1: i32) -> (i32, i32, i32, i32) {
    %c8_i32 = arith.constant 8 : i32
    %0 = arith.muli %arg1, %c8_i32 : i32
    %c1_i32 = arith.constant 1 : i32
    %1 = arith.subi %0, %c1_i32 : i32
    %c0_i32 = arith.constant 0 : i32
    %2 = arith.maxsi %1, %c0_i32 : i32
    %c0_i32_0 = arith.constant 0 : i32
    %c0_i32_1 = arith.constant 0 : i32
    %c0_i32_2 = arith.constant 0 : i32
    return %arg0, %2, %c0_i32_0, %c0_i32_1 : i32, i32, i32, i32
  }
  func.func @transform_2(%arg0: i32, %arg1: i32) -> (i32, i32, i32, i32) {
    %c8_i32 = arith.constant 8 : i32
    %0 = arith.muli %arg1, %c8_i32 : i32
    %c8_i32_0 = arith.constant 8 : i32
    %1 = arith.addi %0, %c8_i32_0 : i32
    %c15_i32 = arith.constant 15 : i32
    %2 = arith.minsi %1, %c15_i32 : i32
    %c0_i32 = arith.constant 0 : i32
    %c0_i32_1 = arith.constant 0 : i32
    %c0_i32_2 = arith.constant 0 : i32
    return %arg0, %2, %c0_i32, %c0_i32_1 : i32, i32, i32, i32
  }
  func.func @transform_3(%arg0: i32, %arg1: i32) -> (i32, i32) {
    %c0_i32 = arith.constant 0 : i32
    %c0_i32_0 = arith.constant 0 : i32
    %c0_i32_1 = arith.constant 0 : i32
    return %c0_i32, %c0_i32_0 : i32, i32
  }
  func.func @transform_4(%arg0: i32, %arg1: i32) -> (i32, i32) {
    %c0_i32 = arith.constant 0 : i32
    %c0_i32_0 = arith.constant 0 : i32
    %c0_i32_1 = arith.constant 0 : i32
    return %c0_i32, %c0_i32_0 : i32, i32
  }
  func.func @transform_5(%arg0: i32, %arg1: i32) -> (i32, i32, i32) {
    %c0_i32 = arith.constant 0 : i32
    %c0_i32_0 = arith.constant 0 : i32
    %c0_i32_1 = arith.constant 0 : i32
    %c0_i32_2 = arith.constant 0 : i32
    return %c0_i32, %c0_i32_0, %c0_i32_1 : i32, i32, i32
  }
  func.func @transform_6(%arg0: i32, %arg1: i32) -> (i32, i32) {
    %c0_i32 = arith.constant 0 : i32
    %c0_i32_0 = arith.constant 0 : i32
    %c0_i32_1 = arith.constant 0 : i32
    return %c0_i32, %c0_i32_0 : i32, i32
  }
  func.func @transform_7(%arg0: i32, %arg1: i32) -> (i32, i32) {
    %c0_i32 = arith.constant 0 : i32
    %c0_i32_0 = arith.constant 0 : i32
    %c0_i32_1 = arith.constant 0 : i32
    return %c0_i32, %c0_i32_0 : i32, i32
  }
  func.func @transform_8(%arg0: i32, %arg1: i32) -> (i32, i32) {
    %c0_i32 = arith.constant 0 : i32
    %c0_i32_0 = arith.constant 0 : i32
    %c0_i32_1 = arith.constant 0 : i32
    return %c0_i32, %c0_i32_0 : i32, i32
  }
  func.func @transform_9(%arg0: i32, %arg1: i32) -> (i32, i32, i32, i32) {
    %c0_i32 = arith.constant 0 : i32
    %c0_i32_0 = arith.constant 0 : i32
    %c0_i32_1 = arith.constant 0 : i32
    return %arg0, %arg1, %c0_i32, %c0_i32_0 : i32, i32, i32, i32
  }
}

</mosaic_0001>

<bundles_post_ra>
// kernel: bottleneck_block.1
= control target key start
LH: loop header
LB: loop body
LE: loop exit
PB: predicated region body
PF: predicated region fallthrough
CT: control target
= control target key end

     0   :  { %s4962_s30 = smov 0   ;;  %s4964_s10 = smov 0   ;;  %s6036_s0 = inlined_call_operand.vmem [shape: bf16[2,16,16,128], index: 0, kind: input, shape index: {}, may-alias: {0,1,2}]   ;;  %s6037_s1 = inlined_call_operand.vmem [shape: bf16[2,16,16,128], index: 1, kind: input, shape index: {}, may-alias: {0,1,2}]   ;;  %s6038_s2 = inlined_call_operand.vmem [shape: bf16[2,16,16,128], index: 2, kind: input, shape index: {}, may-alias: {0,1,2}]   ;;  %s6039_s3 = inlined_call_operand.vmem [shape: bf16[128,128], index: 3, kind: input, shape index: {}]   ;;  %s6040_s4 = inlined_call_operand.vmem [shape: f32[1,128], index: 4, kind: input, shape index: {}]   ;;  %s6041_s5 = inlined_call_operand.vmem [shape: bf16[9,128,128], index: 5, kind: input, shape index: {}]   ;;  %s6042_s6 = inlined_call_operand.vmem [shape: f32[1,128], index: 6, kind: input, shape index: {}]   ;;  %s6043_s7 = inlined_call_operand.vmem [shape: bf16[128,128], index: 7, kind: input, shape index: {}]   ;;  %s6044_s8 = inlined_call_operand.vmem [shape: f32[1,128], index: 8, kind: input, shape index: {}]   ;;  %s6045_s9 = inlined_call_operand.vmem [shape: bf16[2,16,16,128], index: 9, kind: output, shape index: {}]  }
   0x1   :  { %s4966_s11 = smov 0   ;;  %s4968_s12 = smov 0  }
   0x2   :  { %s4970_s13 = smov 0  }
   0x3 LB: > { %s28_s14 = sadd.s32 1, %s4901_s11  ;;  %s31_s15 = sadd.s32 1, %s4905_s12  ;;  %s4909_s13 = sphi %s4970_s13, %s19_s13   ;;  %s4905_s12 = sphi %s4968_s12, %s6104_s12   ;;  %s4901_s11 = sphi %s4966_s11, %s6103_s11   ;;  %s4897_s10 = sphi %s4964_s10, %s6102_s10   ;;  %s4893_s30 = sphi %s4962_s30, %s6101_s30  }
   0x4   : > { %p29_p0 = scmp.ge.s32.totalorder %s28_s14, 2  ;;  %p3566_p1 = scmp.ge.s32.totalorder %s4909_s13, 1 }
   0x5   : > { %p373_p2 = scmp.lt.s32.totalorder %s4909_s13, 5 }
   0x6   : > { %s6106_s14 = smov (%p29_p0, %s28_s14), 0  ;;  %s6108_s15 = smov (!%p29_p0, %s31_s15), %s4905_s12 }
   0x7   : > { %p374_p3 = pnand %p3566_p1, %p373_p2  ;;  %p33_p4 = scmp.ge.s32.totalorder %s6108_s15, 2 }
   0x8   : > { %v4757_v0 = vld [vmem:[%s6039_s3] sm:$0xff] (!%p374_p3)   ;;  %s4998_s18 = sshll.u32 (!%p374_p3), %s4893_s30, 3  ;;  %v4758_v1 = vld [vmem:[%s6039_s3 + $0x8] sm:$0xff] (!%p374_p3)   ;;  %p446_p5 = scmp.lt.s32.totalorder (!%p374_p3), %s4897_s10, 1  ;;  %v4759_v2 = vld [vmem:[%s6039_s3 + $0x10] sm:$0xff] (!%p374_p3)   ;;  %v786_v36 = vlaneseq (!%p374_p3)  ;;  %vm4911_vm7 = vmmov (!%p374_p3), 1  }
   0x9   : > { %s6110_s15 = smov (%p33_p4, %s6108_s15), 0  ;;  %377 = sbr.rel (%p374_p3) target bundleno = 909 (0x38d), region = 56 }
   0xa   : > { %4232 = vmatprep.subr.bf16.mxu0 (!%p374_p3), %v4757_v0  ;;  %p448_p6 = scmp.lt.s32.totalorder (!%p374_p3), %s4998_s18, 15  ;;  %s3572_s24 = sadd.s32 (!%p374_p3), 4294967295, %s4998_s18  ;;  %v4760_v3 = vld [vmem:[%s6039_s3 + $0x18] sm:$0xff] (!%p374_p3)   ;;  %v4761_v4 = vld [vmem:[%s6039_s3 + $0x20] sm:$0xff] (!%p374_p3)   ;;  %v4762_v6 = vld [vmem:[%s6039_s3 + $0x28] sm:$0xff] (!%p374_p3)   ;;  %v5131_v37 = vshrl.u32 (!%p374_p3), %v786_v36, 7 }
   0xb   : > { %4233 = vmatpush3.bf16.msra.mxu0 (!%p374_p3), %v4757_v0  ;;  %p458_p7 = scmp.gt.s32.totalorder (!%p374_p3), %s3572_s24, 0  ;;  %p3573_p8 = scmp.lt.s32.totalorder (!%p374_p3), %s3572_s24, 15  ;;  %v4778_v5 = vld [vmem:[%s6041_s5 + $0xc0] sm:$0xff] (!%p374_p3)   ;;  %v4780_v7 = vld [vmem:[%s6041_s5 + $0xc8] sm:$0xff] (!%p374_p3)   ;;  %v4782_v9 = vld [vmem:[%s6041_s5 + $0xd0] sm:$0xff] (!%p374_p3)  }
   0xc   : > { %4234 = vmatprep.subr.bf16.mxu0 (!%p374_p3), %v4758_v1  ;;  %s474_s28 = sadd.s32 (!%p374_p3), 8, %s4998_s18  ;;  %4364 = vmatprep.subr.bf16.mxu1 (!%p374_p3), %v4778_v5  ;;  %v4763_v10 = vld [vmem:[%s6039_s3 + $0x30] sm:$0xff] (!%p374_p3)   ;;  %v4764_v11 = vld [vmem:[%s6039_s3 + $0x38] sm:$0xff] (!%p374_p3)   ;;  %v4775_v14 = vld [vmem:[%s6041_s5 + $0x40] sm:$0xff] (!%p374_p3)   ;;  %p827_p10 = scmp.gt.s32.totalorder (!%p374_p3), %s4893_s30, 0  ;;  %v789_v38 = vadd.s32 (!%p374_p3), 16, %v5131_v37 }
   0xd   : > { %p5018_p9 = scmp.lt.s32.totalorder (!%p374_p3), %s474_s28, 15  ;;  %4365 = vmatpush3.bf16.msra.mxu1 (!%p374_p3), %v4778_v5  ;;  %v4776_v15 = vld [vmem:[%s6041_s5 + $0x48] sm:$0xff] (!%p374_p3)   ;;  %v4777_v18 = vld [vmem:[%s6041_s5 + $0x50] sm:$0xff] (!%p374_p3)   ;;  %v4779_v19 = vld [vmem:[%s6041_s5 + $0x58] sm:$0xff] (!%p374_p3)   ;;  %v791_v41 = vadd.s32 (!%p374_p3), 32, %v5131_v37  ;;  %v793_v44 = vadd.s32 (!%p374_p3), 48, %v5131_v37 }
   0xe   : > { %4366 = vmatprep.subr.bf16.mxu1 (!%p374_p3), %v4780_v7  ;;  %v4781_v22 = vld [vmem:[%s6041_s5 + $0x60] sm:$0xff] (!%p374_p3)   ;;  %v4783_v23 = vld [vmem:[%s6041_s5 + $0x68] sm:$0xff] (!%p374_p3)   ;;  %v4784_v27 = vld [vmem:[%s6041_s5 + $0xd8] sm:$0xff] (!%p374_p3)   ;;  %v993_v43 = vand.u32 (!%p374_p3), 15, %v789_v38  ;;  %v5143_v47 = vadd.s32 (!%p374_p3), 64, %v5131_v37  ;;  %v5146_v48 = vadd.s32 (!%p374_p3), 80, %v5131_v37 }
   0xf   : > { %4235 = vmatpush3.bf16.msra.mxu0 (!%p374_p3), %v4758_v1  ;;  %v4785_v28 = vld [vmem:[%s6041_s5 + $0x70] sm:$0xff] (!%p374_p3)   ;;  %v4786_v29 = vld [vmem:[%s6041_s5 + $0xe0] sm:$0xff] (!%p374_p3)   ;;  %v4787_v30 = vld [vmem:[%s6041_s5 + $0x78] sm:$0xff] (!%p374_p3)   ;;  %vm1255_vm1 = vcmp.lt.s32.totalorder (!%p374_p3), %v5131_v37, 7  ;;  %vm1376_vm2 = vcmp.lt.s32.totalorder (!%p374_p3), %v5131_v37, 1  ;;  %v1007_v55 = vand.u32 (!%p374_p3), 15, %v791_v41 }
  0x10   : > { %s6112_s10 = smov (!%p446_p5, %s4897_s10), 1  ;;  %4236 = vmatprep.subr.bf16.mxu0 %v4759_v2  ;;  %s6114_s24 = smov (!%p458_p7, %s3572_s24), 0  ;;  %v4788_v31 = vld [vmem:[%s6041_s5 + $0xe8] sm:$0xff]   ;;  %v4789_v32 = vld [vmem:[%s6041_s5 + $0xf0] sm:$0xff]   ;;  %v5118_v33 = vld [vmem:[%s6041_s5] sm:$0xff]   ;;  %vm5157_vm3 = vcmp.gt.s32.totalorder %v993_v43, 0 }
  0x11   : > { %s449_s23 = scalar_select %p448_p6, %s4998_s18, 15  ;;  %4367 = vmatpush3.bf16.msra.mxu1 %v4780_v7  ;;  %v4791_v34 = vld [vmem:[%s6041_s5 + $0xf8] sm:$0xff]   ;;  %v5127_v35 = vld [vmem:[%s6041_s5 + $0x100] sm:$0xff]   ;;  %v1021_v59 = vand.u32 15, %v793_v44  ;;  %v1035_v61 = vand.u32 15, %v5143_v47  ;;  %v1049_v62 = vand.u32 15, %v5146_v48  ;;  %vm5219_vm8 = vmpackc.low %vm4911_vm7, %vm5157_vm3 }
  0x12   : > { %s5012_s27 = sshll.u32 %s6112_s10, 5  ;;  %s6116_s24 = smov (!%p3573_p8, %s6114_s24), 15  ;;  %4368 = vmatprep.subr.bf16.mxu1 %v4782_v9  ;;  %v5137_v39 = vld [vmem:[%s6040_s4] ss:$0 sm:$0xff]  ;;  %v5170_v1 = vadd.s32 96, %v5131_v37  ;;  %vm5180_vm5 = vcmp.gt.s32.totalorder %v1007_v55, 0 }
  0x13   : > { %4237 = vmatpush3.bf16.msra.mxu0 %v4759_v2  ;;  %s3568_s17 = sshll.u32 %s449_s23, 1  ;;  %s3578_s20 = sshll.u32 %s6116_s24, 1  ;;  %v5173_v2 = vadd.s32 112, %v5131_v37  ;;  %vm5190_vm6 = vcmp.gt.s32.totalorder %v1021_v59, 0  ;;  %v4794_v41 = vld [vmem:[%s6041_s5 + $0x10] sm:$0xff]   ;;  %vm5263_vm9 = vcmp.gt.s32.totalorder %v1035_v61, 0  ;;  %vm5300_vm11 = vmpackc.low %vm4911_vm7, %vm5180_vm5 }
  0x14   : > { %4238 = vmatprep.subr.bf16.mxu0 %v4760_v3  ;;  %s466_s25 = sadd.s32 %s3578_s20, %s5012_s27  ;;  %s5030_s26 = sadd.s32 %s5012_s27, %s3568_s17  ;;  %vm5273_vm10 = vcmp.gt.s32.totalorder %v1049_v62, 0  ;;  %v4796_v48 = vld [vmem:[%s6041_s5 + $0x18] sm:$0xff]   ;;  %vm5317_vm12 = vmpackc.low %vm4911_vm7, %vm5190_vm6 }
  0x15   : > { %s3580_s23 = sshll.u32 %s466_s25, 2  ;;  %s6118_s28 = smov (!%p5018_p9, %s474_s28), 15  ;;  %4369 = vmatpush3.bf16.msra.mxu1 %v4782_v9  ;;  %vm5410_vm15 = vmpackc.low %vm4911_vm7, %vm5263_vm9 }
  0x16   : > { %s468_s22 = scalar_lea.vmem %s6037_s1, %s3580_s23  ;;  %s3570_s17 = sshll.u32 %s5030_s26, 2  ;;  %4370 = vmatprep.subr.bf16.mxu1 %v4784_v27  ;;  %vm5430_vm3 = vmpackc.low %vm4911_vm7, %vm5273_vm10 }
  0x17   : > { %4239 = vmatpush3.bf16.msra.mxu0 %v4760_v3  ;;  %v4765_v8 = vld [vmem:[%s468_s22] sm:$0xff]   ;;  %s6120_s28 = smov (!%p5018_p9, %s6118_s28), 15  ;;  %s5054_s24 = scalar_lea.vmem %s6036_s0, %s3570_s17 }
  0x18   : > { %4240 = vmatprep.subr.bf16.mxu0 %v4761_v4  ;;  %4248 = vmatprep.mubr.bf16.mxu0 %v4765_v8  ;;  %s3585_s16 = sshll.u32 %s6120_s28, 1  ;;  %v502_v12 = vld [vmem:[%s5054_s24] sm:$0xff]   ;;  %v504_v13 = vld [vmem:[%s5054_s24 + $0x8] sm:$0xff]   ;;  %v506_v16 = vld [vmem:[%s5054_s24 + $0x10] sm:$0xff]   ;;  %p871_p11 = scmp.lt.s32.totalorder %s4893_s30, 1 }
  0x19   : > { %s483_s21 = sadd.s32 %s3585_s16, %s5012_s27  ;;  %v508_v17 = vld [vmem:[%s5054_s24 + $0x18] sm:$0xff]   ;;  %v510_v20 = vld [vmem:[%s5054_s24 + $0x20] sm:$0xff]   ;;  %v512_v21 = vld [vmem:[%s5054_s24 + $0x28] sm:$0xff]   ;;  %4371 = vmatpush3.bf16.msra.mxu1 %v4784_v27  ;;  %s5995_s27 = scalar_lea.vmem %s6045_s9, %s3570_s17 }
  0x1a   : > { %s5060_s19 = sshll.u32 %s483_s21, 2  ;;  %v514_v24 = vld [vmem:[%s5054_s24 + $0x30] sm:$0xff]   ;;  %v516_v25 = vld [vmem:[%s5054_s24 + $0x38] sm:$0xff]   ;;  %4372 = vmatprep.subr.bf16.mxu1 %v4786_v29 }
  0x1b   : > { %4241 = vmatpush3.bf16.msra.mxu0 %v4761_v4  ;;  %s485_s25 = scalar_lea.vmem %s6038_s2, %s5060_s19 }
  0x1c   : > { %4242 = vmatprep.subr.bf16.mxu0 %v4762_v6  ;;  %v4774_v26 = vld [vmem:[%s485_s25] sm:$0xff]   ;;  %s828_s19 = scalar_select %p827_p10, 1, 0 }
  0x1d   : > { %4373 = vmatpush3.bf16.msra.mxu1 %v4786_v29  ;;  %s5291_s20 = scalar_select %p871_p11, 1, 0  ;;  %v4812_v29 = vld [vmem:[%s6041_s5 + $0x98] sm:$0xff]  }
  0x1e   : > { %4374 = vmatprep.subr.bf16.mxu1 %v4788_v31  ;;  %v829_v40 = vstv %s828_s19 }
  0x1f   : > { %4243 = vmatpush3.bf16.msra.mxu0 %v4762_v6  ;;  %vm5149_vm0 = vcmp.eq.s32.totalorder %v829_v40, 1 }
  0x20   : > { %4244 = vmatprep.subr.bf16.mxu0 %v4763_v10  ;;  %vm3635_vm4 = vmpackc.low %vm5149_vm0, %vm5149_vm0 }
  0x21   : > { %4375 = vmatpush3.bf16.msra.mxu1 %v4788_v31 }
  0x22   : > { %4376 = vmatprep.subr.bf16.mxu1 %v4789_v32 }
  0x23   : > { %4245 = vmatpush3.bf16.msra.mxu0 %v4763_v10 }
  0x24   : > { %4246 = vmatprep.subr.bf16.mxu0 %v4764_v11 }
  0x25   : > { %4377 = vmatpush3.bf16.msra.mxu1 %v4789_v32 }
  0x26   : > { %4378 = vmatprep.subr.bf16.mxu1 %v4791_v34 }
  0x27   : > { %4247 = vmatpush3.bf16.msra.mxu0 %v4764_v11 }
  0x28   : > { %4268 = vmatprep.subr.bf16.mxu0 %v4775_v14 }
  0x29   : > { %4379 = vmatpush3.bf16.msra.mxu1 %v4791_v34 }
  0x2a   : > { %4249 = vmatmul.mubr.bf16.vlgmr.msra.gmra.mrb[0].mxu0 %v502_v12  ;;  %4396 = vmatprep.subr.bf16.mxu1 %v5127_v35 }
  0x2b   : > { %4252 = vmatprep.mubr.bf16.mxu0 %v504_v13  ;;  %4269 = vmatpush3.bf16.msra.mxu0 %v4775_v14 }
  0x2c   : > { %4270 = vmatprep.subr.bf16.mxu0 %v4776_v15 }
  0x2f   : > { %4271 = vmatpush3.bf16.msra.mxu0 %v4776_v15 }
  0x30   : > { %4272 = vmatprep.subr.bf16.mxu0 %v4777_v18 }
  0x32   : > { %4253 = vmatmul.mubr.bf16.gmra.mrb[4].mxu0 %v506_v16 }
  0x33   : > { %4256 = vmatprep.mubr.bf16.mxu0 %v508_v17  ;;  %4273 = vmatpush3.bf16.msra.mxu0 %v4777_v18 }
  0x34   : > { %4274 = vmatprep.subr.bf16.mxu0 %v4779_v19 }
  0x37   : > { %4275 = vmatpush3.bf16.msra.mxu0 %v4779_v19  ;;  %v4792_v19 = vld [vmem:[%s6041_s5 + $0x8] sm:$0xff]  }
  0x38   : > { %4276 = vmatprep.subr.bf16.mxu0 %v4781_v22 }
  0x3a   : > { %4257 = vmatmul.mubr.bf16.gmra.mrb[8].mxu0 %v510_v20 }
  0x3b   : > { %4260 = vmatprep.mubr.bf16.mxu0 %v512_v21  ;;  %4277 = vmatpush3.bf16.msra.mxu0 %v4781_v22 }
  0x3c   : > { %4278 = vmatprep.subr.bf16.mxu0 %v4783_v23 }
  0x3f   : > { %4279 = vmatpush3.bf16.msra.mxu0 %v4783_v23 }
  0x40   : > { %4280 = vmatprep.subr.bf16.mxu0 %v4785_v28 }
  0x42   : > { %4261 = vmatmul.mubr.bf16.gmra.mrb[12].mxu0 %v514_v24  ;;  %v1063_v24 = vand.u32 15, %v5170_v1 }
  0x43   : > { %4264 = vmatprep.mubr.bf16.mxu0 %v516_v25  ;;  %4281 = vmatpush3.bf16.msra.mxu0 %v4785_v28 }
  0x44   : > { %4282 = vmatprep.subr.bf16.mxu0 %v4787_v30  ;;  %vm5368_vm13 = vcmp.gt.s32.totalorder %v1063_v24, 0 }
  0x47   : > { %4283 = vmatpush3.bf16.msra.mxu0 %v4787_v30 }
  0x48   : > { %4300 = vmatprep.subr.bf16.mxu0 %v5118_v33 }
  0x4a   : > { %4265 = vmatmul.mubr.bf16.gmra.mrb[16].mxu0 %v4774_v26 }
  0xfd   : > { %v4250_v42 = vpop.f32.mrb[0].mxu0 }
  0xfe   : > { %v696_v45 = vadd.f32 %v4250_v42, %v5137_v39  ;;  %v687_v46 = vpop.f32.mrb[1].mxu0  ;;  %v1077_v42 = vand.u32 15, %v5173_v2 }
  0xff   : > { %v688_v49 = vadd.f32 %v5137_v39, %v687_v46  ;;  %v4251_v51 = vpop.f32.mrb[2].mxu0 }
 0x100   : > { %v768_v52 = vmax.f32 %v696_v45, 0.0  ;;  %v699_v53 = vadd.f32 %v4251_v51, %v5137_v39  ;;  %v690_v54 = vpop.f32.mrb[3].mxu0  ;;  %vm5381_vm14 = vcmp.gt.s32.totalorder %v1077_v42, 0 }
 0x101   : > { %v766_v56 = vmax.f32 %v688_v49, 0.0  ;;  %v691_v57 = vadd.f32 %v5137_v39, %v690_v54  ;;  %vm5520_vm6 = vmpackc.low %vm4911_vm7, %vm5381_vm14 }
 0x102   : > { %v5161_v60 = vmax.f32 %v699_v53, 0.0  ;;  %v1237_v3 = vrot.slane %v768_v52, 1  ;;  %v1358_v4 = vrot.slane %v768_v52, 7 }
 0x103   : > { %v5167_v63 = vsel %vm5149_vm0, %v766_v56, 0.0  ;;  %v767_v0 = vmax.f32 %v691_v57, 0.0 }
 0x104   : > { %v1238_v5 = vrot.slane %v5161_v60, 1  ;;  %v1359_v6 = vrot.slane %v5161_v60, 7  ;;  %v1356_v8 = vrot.slane %v5167_v63, 7  ;;  %v5186_v9 = vpack.c.bf16 %v5161_v60, %v768_v52 }
 0x105   : > { %v956_v10 = vsel %vm5149_vm0, %v767_v0, 0.0  ;;  %v3636_v11 = vpack.c.bf16 %v767_v0, %v766_v56  ;;  %v4254_v12 = vpop.f32.mrb[4].mxu0  ;;  %v1235_v20 = vrot.slane %v5167_v63, 1 }
 0x106   : > { %v1272_v14 = vsel %vm1255_vm1, %v1237_v3, %v1238_v5  ;;  %v1236_v15 = vrot.slane %v956_v10, 1  ;;  %v1357_v16 = vrot.slane %v956_v10, 7  ;;  %v712_v17 = vadd.f32 %v4254_v12, %v5137_v39  ;;  %v703_v18 = vpop.f32.mrb[5].mxu0 }
 0x107   : > { %v704_v21 = vadd.f32 %v5137_v39, %v703_v18  ;;  %v4255_v22 = vpop.f32.mrb[6].mxu0  ;;  %4284 = vmatprep.mubr.msk.bf16.mxu0 %vm3635_vm4, %v3636_v11  ;;  %v1393_v23 = vsel %vm1376_vm2, %v1358_v4, %v1359_v6  ;;  %v4795_v18 = vld [vmem:[%s6041_s5 + $0x108] sm:$0xff]   ;;  %vm5503_vm4 = vmpackc.low %vm4911_vm7, %vm5368_vm13 }
 0x108   : > { %v5210_v25 = vmax.f32 %v712_v17, 0.0  ;;  %v715_v26 = vadd.f32 %v4255_v22, %v5137_v39  ;;  %v706_v27 = vpop.f32.mrb[7].mxu0  ;;  %4285 = vmatmul.mubr.bf16.vlgmr.msra.gmra.mrb[20].mxu0 %v5186_v9  ;;  %v1394_v28 = vsel %vm1376_vm2, %v1357_v16, %v1358_v4  ;;  %v5227_v30 = vsel %vm1376_vm2, %v1356_v8, %v1357_v16  ;;  %v4835_v16 = vld [vmem:[%s6041_s5 + $0x1e0] sm:$0xff]  }
 0x109   : > { %v770_v31 = vmax.f32 %v704_v21, 0.0  ;;  %v707_v32 = vadd.f32 %v5137_v39, %v706_v27  ;;  %v5230_v34 = vpack.c.bf16 %v1393_v23, %v1394_v28  ;;  %4301 = vmatpush3.bf16.msra.mxu0 %v5118_v33  ;;  %v5235_v36 = vsel %vm1255_vm1, %v1236_v15, %v1237_v3 }
 0x10a   : > { %v1241_v38 = vrot.slane %v5210_v25, 1  ;;  %v5238_v40 = vmax.f32 %v715_v26, 0.0  ;;  %4302 = vmatprep.subr.bf16.mxu0 %v4792_v19  ;;  %v5249_v33 = vsel %vm1255_vm1, %v1235_v20, %v1236_v15  ;;  %v1362_v47 = vrot.slane %v5210_v25, 7 }
 0x10b   : > { %v1239_v43 = vrot.slane %v770_v31, 1  ;;  %v1360_v44 = vrot.slane %v770_v31, 7  ;;  %v771_v45 = vmax.f32 %v707_v32, 0.0  ;;  %4380 = vmatprep.mubr.msk.bf16.mxu1 %vm5219_vm8, %v5230_v34  ;;  %v3695_v46 = vpack.c.bf16 %v5235_v36, %v5249_v33  ;;  %v4822_v33 = vld [vmem:[%s6041_s5 + $0x178] sm:$0xff]  }
 0x10c   : > { %v1242_v49 = vrot.slane %v5238_v40, 1  ;;  %v1363_v50 = vrot.slane %v5238_v40, 7  ;;  %v5261_v51 = vpack.c.bf16 %v5238_v40, %v5210_v25  ;;  %v4798_v25 = vld [vmem:[%s6041_s5 + $0x20] sm:$0xff]   ;;  %v873_v26 = vstv %s5291_s20  ;;  %v4836_v40 = vld [vmem:[%s6041_s5 + $0x1e8] sm:$0xff]  }
 0x10d   : > { %v1271_v53 = vsel %vm1255_vm1, %v1238_v5, %v1239_v43  ;;  %v1240_v54 = vrot.slane %v771_v45, 1  ;;  %v1361_v55 = vrot.slane %v771_v45, 7  ;;  %v4258_v56 = vpop.f32.mrb[8].mxu0  ;;  %v5269_v57 = vpack.c.bf16 %v771_v45, %v770_v31  ;;  %4303 = vmatpush3.bf16.msra.mxu0 %v4792_v19 }
 0x10e   : > { %v5277_v59 = vpack.c.bf16 %v1271_v53, %v1272_v14  ;;  %v728_v60 = vadd.f32 %v4258_v56, %v5137_v39  ;;  %v719_v61 = vpop.f32.mrb[9].mxu0  ;;  %v1392_v0 = vsel %vm1376_vm2, %v1359_v6, %v1360_v44  ;;  %4304 = vmatprep.subr.bf16.mxu0 %v4794_v41  ;;  %v1389_v3 = vsel %vm1376_vm2, %v1362_v47, %v1363_v50  ;;  %v4797_v53 = vld [vmem:[%s6041_s5 + $0x110] sm:$0xff]  }
 0x10f   : > { %v720_v62 = vadd.f32 %v5137_v39, %v719_v61  ;;  %v4259_v4 = vpop.f32.mrb[10].mxu0  ;;  %4288 = vmatprep.mubr.bf16.mxu0 %v5269_v57  ;;  %v1391_v5 = vsel %vm1376_vm2, %v1360_v44, %v1361_v55  ;;  %v1390_v10 = vsel %vm1376_vm2, %v1361_v55, %v1362_v47  ;;  %v1269_v11 = vsel %vm1255_vm1, %v1240_v54, %v1241_v38  ;;  %v4833_v6 = vld [vmem:[%s6041_s5 + $0x1d0] sm:$0xff]  }
 0x110   : > { %v5308_v12 = vmax.f32 %v728_v60, 0.0  ;;  %v731_v14 = vadd.f32 %v4259_v4, %v5137_v39  ;;  %v722_v15 = vpop.f32.mrb[11].mxu0  ;;  %4289 = vmatmul.mubr.bf16.gmra.mrb[24].mxu0 %v5261_v51  ;;  %v5312_v7 = vpack.c.bf16 %v1391_v5, %v1392_v0  ;;  %v5321_v17 = vpack.c.bf16 %v1389_v3, %v1390_v10  ;;  %v4847_v5 = vld [vmem:[%s6043_s7] sm:$0xff]  }
 0x111   : > { %v5326_v19 = vmax.f32 %v720_v62, 0.0  ;;  %v723_v21 = vadd.f32 %v5137_v39, %v722_v15  ;;  %4305 = vmatpush3.bf16.msra.mxu0 %v4794_v41  ;;  %v1270_v22 = vsel %vm1255_vm1, %v1239_v43, %v1240_v54  ;;  %v1268_v13 = vsel %vm1255_vm1, %v1241_v38, %v1242_v49  ;;  %v4837_v15 = vld [vmem:[%s6041_s5 + $0x1f0] sm:$0xff]  }
 0x112   : > { %v5335_v23 = vmax.f32 %v731_v14, 0.0  ;;  %4381 = vmatmul.mubr.msk.bf16.vlgmr.msra.gmra.mrb[0].mxu1 %vm5300_vm11, %v5312_v7  ;;  %4306 = vmatprep.subr.bf16.mxu0 %v4796_v48  ;;  %v5345_v27 = vadd.s32 128, %v5131_v37  ;;  %v5347_v28 = vpack.c.bf16 %v1269_v11, %v1270_v22  ;;  %v1245_v31 = vrot.slane %v5308_v12, 1 }
 0x113   : > { %v1243_v32 = vrot.slane %v5326_v19, 1  ;;  %v1364_v38 = vrot.slane %v5326_v19, 7  ;;  %v775_v41 = vmax.f32 %v723_v21, 0.0  ;;  %4397 = vmatpush3.bf16.msra.mxu1 %v5127_v35  ;;  %4384 = vmatprep.mubr.msk.bf16.mxu1 %vm5317_vm12, %v5321_v17  ;;  %v1366_v43 = vrot.slane %v5308_v12, 7 }
 0x114   : > { %v1246_v44 = vrot.slane %v5335_v23, 1  ;;  %v1367_v45 = vrot.slane %v5335_v23, 7  ;;  %4398 = vmatprep.subr.bf16.mxu1 %v4795_v18  ;;  %v5361_v47 = vpack.c.bf16 %v5335_v23, %v5308_v12  ;;  %vm5416_vm0 = vcmp.eq.s32.totalorder %v873_v26, 1  ;;  %v4839_v23 = vld [vmem:[%s6041_s5 + $0x200] sm:$0xff]  }
 0x115   : > { %v1244_v54 = vrot.slane %v775_v41, 1  ;;  %v1365_v55 = vrot.slane %v775_v41, 7  ;;  %v4262_v56 = vpop.f32.mrb[12].mxu0  ;;  %v5373_v60 = vpack.c.bf16 %v775_v41, %v5326_v19  ;;  %4307 = vmatpush3.bf16.msra.mxu0 %v4796_v48  ;;  %v1388_v61 = vsel %vm1376_vm2, %v1363_v50, %v1364_v38  ;;  %v4800_v48 = vld [vmem:[%s6041_s5 + $0x28] sm:$0xff]   ;;  %v4799_v19 = vld [vmem:[%s6041_s5 + $0x118] sm:$0xff]  }
 0x116   : > { %v744_v24 = vadd.f32 %v4262_v56, %v5137_v39  ;;  %v735_v0 = vpop.f32.mrb[13].mxu0  ;;  %4308 = vmatprep.subr.bf16.mxu0 %v4798_v25  ;;  %v1385_v3 = vsel %vm1376_vm2, %v1366_v43, %v1367_v45  ;;  %v1267_v2 = vsel %vm1255_vm1, %v1242_v49, %v1243_v32  ;;  %v5401_v42 = vsel %vm1255_vm1, %v1245_v31, %v1246_v44 }
 0x117   : > { %v736_v50 = vadd.f32 %v5137_v39, %v735_v0  ;;  %4399 = vmatpush3.bf16.msra.mxu1 %v4795_v18  ;;  %v4263_v62 = vpop.f32.mrb[14].mxu0  ;;  %4292 = vmatprep.mubr.bf16.mxu0 %v5373_v60  ;;  %v1387_v4 = vsel %vm1376_vm2, %v1364_v38, %v1365_v55  ;;  %v1386_v49 = vsel %vm1376_vm2, %v1365_v55, %v1366_v43  ;;  %v979_v10 = vand.u32 15, %v5131_v37  ;;  %v4802_v43 = vld [vmem:[%s6041_s5 + $0x30] sm:$0xff]  }
 0x118   : > { %v5421_v11 = vmax.f32 %v744_v24, 0.0  ;;  %v747_v12 = vadd.f32 %v4263_v62, %v5137_v39  ;;  %v738_v14 = vpop.f32.mrb[15].mxu0  ;;  %4293 = vmatmul.mubr.bf16.gmra.mrb[28].mxu0 %v5361_v47  ;;  %4400 = vmatprep.subr.bf16.mxu1 %v4797_v53  ;;  %v5425_v52 = vpack.c.bf16 %v1387_v4, %v1388_v61  ;;  %v5434_v18 = vpack.c.bf16 %v1385_v3, %v1386_v49 }
 0x119   : > { %v5439_v21 = vmax.f32 %v736_v50, 0.0  ;;  %v739_v22 = vadd.f32 %v5137_v39, %v738_v14  ;;  %4309 = vmatpush3.bf16.msra.mxu0 %v4798_v25  ;;  %v5442_v26 = vpack.c.bf16 %v1267_v2, %v1268_v13  ;;  %v1265_v58 = vsel %vm1255_vm1, %v1244_v54, %v1245_v31 }
 0x11a   : > { %v1249_v38 = vrot.slane %v5421_v11, 1  ;;  %v5447_v41 = vmax.f32 %v747_v12, 0.0  ;;  %4385 = vmatmul.mubr.msk.bf16.gmra.mrb[4].mxu1 %vm5410_vm15, %v5425_v52  ;;  %4310 = vmatprep.subr.bf16.mxu0 %v4800_v48  ;;  %v1091_v25 = vand.u32 15, %v5345_v27  ;;  %v1266_v13 = vsel %vm1255_vm1, %v1243_v32, %v1244_v54  ;;  %v4804_v12 = vld [vmem:[%s6041_s5 + $0x38] sm:$0xff]  }
 0x11b   : > { %v1247_v31 = vrot.slane %v5439_v21, 1  ;;  %v1368_v55 = vrot.slane %v5439_v21, 7  ;;  %v779_v56 = vmax.f32 %v739_v22, 0.0  ;;  %4401 = vmatpush3.bf16.msra.mxu1 %v4797_v53  ;;  %4388 = vmatprep.mubr.msk.bf16.mxu1 %vm5430_vm3, %v5434_v18  ;;  %v5463_v61 = vpack.c.bf16 %v1265_v58, %v1266_v13  ;;  %v4801_v53 = vld [vmem:[%s6041_s5 + $0x120] sm:$0xff]  }
 0x11c   : > { %v1370_v24 = vrot.slane %v5421_v11, 7  ;;  %v1250_v0 = vrot.slane %v5447_v41, 1  ;;  %v1371_v27 = vrot.slane %v5447_v41, 7  ;;  %4402 = vmatprep.subr.bf16.mxu1 %v4799_v19  ;;  %v5470_v32 = vpack.c.bf16 %v5447_v41, %v5421_v11 }
 0x11d   : > { %v1248_v54 = vrot.slane %v779_v56, 1  ;;  %v1369_v3 = vrot.slane %v779_v56, 7  ;;  %v4266_v2 = vpop.f32.mrb[16].mxu0  ;;  %v5476_v50 = vpack.c.bf16 %v779_v56, %v5439_v21  ;;  %4311 = vmatpush3.bf16.msra.mxu0 %v4800_v48  ;;  %v1384_v62 = vsel %vm1376_vm2, %v1367_v45, %v1368_v55 }
 0x11e   : > { %v760_v4 = vadd.f32 %v4266_v2, %v5137_v39  ;;  %v751_v49 = vpop.f32.mrb[17].mxu0  ;;  %4312 = vmatprep.subr.bf16.mxu0 %v4802_v43  ;;  %v1381_v11 = vsel %vm1376_vm2, %v1370_v24, %v1371_v27  ;;  %v1263_v48 = vsel %vm1255_vm1, %v1246_v44, %v1247_v31  ;;  %v1260_v45 = vsel %vm1255_vm1, %v1249_v38, %v1250_v0 }
 0x11f   : > { %v752_v14 = vadd.f32 %v5137_v39, %v751_v49  ;;  %4403 = vmatpush3.bf16.msra.mxu1 %v4799_v19  ;;  %v4267_v21 = vpop.f32.mrb[18].mxu0  ;;  %4296 = vmatprep.mubr.bf16.mxu0 %v5476_v50  ;;  %v1383_v22 = vsel %vm1376_vm2, %v1368_v55, %v1369_v3  ;;  %v1382_v44 = vsel %vm1376_vm2, %v1369_v3, %v1370_v24  ;;  %vm5509_vm5 = vcmp.gt.s32.totalorder %v979_v10, 0  ;;  %v4803_v24 = vld [vmem:[%s6041_s5 + $0x128] sm:$0xff]   ;;  %v4842_v55 = vld [vmem:[%s6041_s5 + $0x218] sm:$0xff]  }
 0x120   : > { %v784_v19 = vmax.f32 %v760_v4, 0.0  ;;  %v763_v13 = vadd.f32 %v4267_v21, %v5137_v39  ;;  %v754_v56 = vpop.f32.mrb[19].mxu0  ;;  %4297 = vmatmul.mubr.bf16.gmra.mrb[32].mxu0 %v5470_v32  ;;  %4404 = vmatprep.subr.bf16.mxu1 %v4801_v53  ;;  %v5515_v35 = vpack.c.bf16 %v1383_v22, %v1384_v62  ;;  %v5524_v10 = vpack.c.bf16 %v1381_v11, %v1382_v44  ;;  %vm3646_vm10 = vmpackc.low %vm4911_vm7, %vm5509_vm5  ;;  %v4807_v11 = vld [vmem:[%s6041_s5 + $0x138] sm:$0xff]  }
 0x121   : > { %v782_v3 = vmax.f32 %v752_v14, 0.0  ;;  %v755_v2 = vadd.f32 %v5137_v39, %v754_v56  ;;  %4313 = vmatpush3.bf16.msra.mxu0 %v4802_v43  ;;  %v5531_v62 = vpack.c.bf16 %v1263_v48, %v5401_v42  ;;  %v1261_v1 = vsel %vm1255_vm1, %v1248_v54, %v1249_v38  ;;  %v4806_v39 = vld [vmem:[%s6041_s5 + $0x80] sm:$0xff]  }
 0x122   : > { %v973_v4 = vsel %vm5416_vm0, %v784_v19, 0.0  ;;  %v785_v49 = vmax.f32 %v763_v13, 0.0  ;;  %4389 = vmatmul.mubr.msk.bf16.gmra.mrb[8].mxu1 %vm5503_vm4, %v5515_v35  ;;  %4314 = vmatprep.subr.bf16.mxu0 %v4804_v12  ;;  %vm5540_vm9 = vcmp.gt.s32.totalorder %v1091_v25, 0  ;;  %v1262_v42 = vsel %vm1255_vm1, %v1247_v31, %v1248_v54  ;;  %v4805_v31 = vld [vmem:[%s6041_s5 + $0x130] sm:$0xff]  }
 0x123   : > { %v1253_v38 = vrot.slane %v973_v4, 1  ;;  %v1374_v43 = vrot.slane %v973_v4, 7  ;;  %v1251_v48 = vrot.slane %v782_v3, 1  ;;  %v1372_v14 = vrot.slane %v782_v3, 7  ;;  %4405 = vmatpush3.bf16.msra.mxu1 %v4801_v53  ;;  %4392 = vmatprep.mubr.msk.bf16.mxu1 %vm5520_vm6, %v5524_v10  ;;  %vm5598_vm13 = vmpackc.low %vm4911_vm7, %vm5540_vm9 }
 0x124   : > { %v974_v25 = vsel %vm5416_vm0, %v785_v49, 0.0  ;;  %v5554_v21 = vpack.c.bf16 %v785_v49, %v784_v19  ;;  %v783_v22 = vmax.f32 %v755_v2, 0.0  ;;  %4406 = vmatprep.subr.bf16.mxu1 %v4803_v24  ;;  %v5559_v54 = vpack.c.bf16 %v1261_v1, %v1262_v42  ;;  %v4808_v42 = vld [vmem:[%s6041_s5 + $0x88] sm:$0xff]  }
 0x125   : > { %v1254_v44 = vrot.slane %v974_v25, 1  ;;  %v1375_v13 = vrot.slane %v974_v25, 7  ;;  %4315 = vmatpush3.bf16.msra.mxu0 %v4804_v12  ;;  %v1380_v53 = vsel %vm1376_vm2, %v1371_v27, %v1372_v14  ;;  %v1259_v19 = vsel %vm1255_vm1, %v1250_v0, %v1251_v48  ;;  %v4815_v25 = vld [vmem:[%s6041_s5 + $0x158] sm:$0xff]  }
 0x126   : > { %v1252_v56 = vrot.slane %v783_v22, 1  ;;  %v1373_v2 = vrot.slane %v783_v22, 7  ;;  %4332 = vmatprep.subr.bf16.mxu0 %v4806_v39  ;;  %v5567_v4 = vpack.c.bf16 %v783_v22, %v782_v3  ;;  %v5569_v49 = vpack.c.bf16 %v1259_v19, %v1260_v45  ;;  %v4816_v22 = vld [vmem:[%s6041_s5 + $0xa8] sm:$0xff]  }
 0x127   : > { %4407 = vmatpush3.bf16.msra.mxu1 %v4803_v24  ;;  %v1396_v12 = vsel %vm1376_vm2, %v1375_v13, %v1356_v8  ;;  %v5580_v41 = vsel %vm1376_vm2, %v1374_v43, %v1375_v13  ;;  %v5584_v0 = vsel %vm1255_vm1, %v1253_v38, %v1254_v44  ;;  %v5590_v27 = vsel %vm1255_vm1, %v1254_v44, %v1235_v20  ;;  %v4817_v44 = vld [vmem:[%s6041_s5 + $0x160] sm:$0xff]   ;;  %v4818_v13 = vld [vmem:[%s6041_s5 + $0xb0] sm:$0xff]  }
 0x128   : > { %4408 = vmatprep.subr.bf16.mxu1 %v4805_v31  ;;  %v3647_v8 = vpack.c.bf16 %v5227_v30, %v1396_v12  ;;  %v1379_v45 = vsel %vm1376_vm2, %v1372_v14, %v1373_v2  ;;  %v1257_v63 = vsel %vm1255_vm1, %v1252_v56, %v1253_v38  ;;  %v1258_v20 = vsel %vm1255_vm1, %v1251_v48, %v1252_v56  ;;  %v4810_v48 = vld [vmem:[%s6041_s5 + $0x90] sm:$0xff]   ;;  %v4819_v56 = vld [vmem:[%s6041_s5 + $0x168] sm:$0xff]  }
 0x129   : > { %v5606_v24 = vpack.c.bf16 %v1379_v45, %v1380_v53  ;;  %v5608_v3 = vpack.c.bf16 %v1257_v63, %v1258_v20  ;;  %v5612_v30 = vsel %vm1376_vm2, %v1373_v2, %v1374_v43  ;;  %v3959_v1 = vpack.c.bf16 %v5590_v27, %v5584_v0  ;;  %v4809_v43 = vld [vmem:[%s6041_s5 + $0x140] sm:$0xff]   ;;  %v4820_v2 = vld [vmem:[%s6041_s5 + $0xb8] sm:$0xff]   ;;  %v4821_v45 = vld [vmem:[%s6041_s5 + $0x170] sm:$0xff]  }
 0x12a   : > { %4316 = vmatprep.mubr.msk.bf16.mxu0 %vm3646_vm10, %v3647_v8  ;;  %v3884_v38 = vpack.c.bf16 %v5580_v41, %v5612_v30  ;;  %v788_v14 = vadd.s32 8, %v5131_v37  ;;  %v790_v53 = vadd.s32 24, %v5131_v37  ;;  %v792_v19 = vadd.s32 40, %v5131_v37 }
 0x12b   : > { %4393 = vmatmul.mubr.msk.bf16.gmra.mrb[12].mxu1 %vm5598_vm13, %v5606_v24  ;;  %4317 = vmatmul.mubr.msk.bf16.vlgmr.msra.gmra.mrb[20].mxu0 %vm5219_vm8, %v5230_v34  ;;  %v4813_v34 = vld [vmem:[%s6041_s5 + $0x150] sm:$0xff]   ;;  %v794_v63 = vadd.s32 56, %v5131_v37  ;;  %v796_v20 = vadd.s32 72, %v5131_v37 }
 0x12c   : > { %4409 = vmatpush3.bf16.msra.mxu1 %v4805_v31  ;;  %4412 = vmatprep.mubr.bf16.mxu1 %v5186_v9  ;;  %v4811_v9 = vld [vmem:[%s6041_s5 + $0x148] sm:$0xff]   ;;  %v986_v31 = vand.u32 15, %v788_v14  ;;  %v1000_v12 = vand.u32 15, %v790_v53  ;;  %v1014_v8 = vand.u32 15, %v792_v19  ;;  %v4825_v14 = vld [vmem:[%s6041_s5 + $0x190] sm:$0xff]   ;;  %v4827_v53 = vld [vmem:[%s6041_s5 + $0x1a0] sm:$0xff]  }
 0x12d   : > { %4320 = vmatprep.mubr.msk.bf16.mxu0 %vm5300_vm11, %v5312_v7  ;;  %4333 = vmatpush3.bf16.msra.mxu0 %v4806_v39  ;;  %v4814_v39 = vld [vmem:[%s6041_s5 + $0xa0] sm:$0xff]   ;;  %v804_v19 = vadd.s32 136, %v5131_v37 }
 0x12e   : > { %4410 = vmatprep.subr.bf16.mxu1 %v4807_v11  ;;  %4334 = vmatprep.subr.bf16.mxu0 %v4808_v42  ;;  %vm1216_vm1 = vcmp.lt.s32.totalorder %v986_v31, 15  ;;  %vm1218_vm8 = vcmp.lt.s32.totalorder %v1000_v12, 15  ;;  %vm1220_vm14 = vcmp.lt.s32.totalorder %v1014_v8, 15  ;;  %v4829_v8 = vld [vmem:[%s6041_s5 + $0x1b0] sm:$0xff]  }
 0x12f   : > { %vm3694_vm2 = vmpackc.low %vm1216_vm1, %vm4911_vm7  ;;  %v1098_v12 = vand.u32 15, %v804_v19 }
 0x130   : > { %4411 = vmatpush3.bf16.msra.mxu1 %v4807_v11  ;;  %vm3697_vm5 = vmpackc.low %vm1218_vm8, %vm4911_vm7  ;;  %v1042_v11 = vand.u32 15, %v796_v20  ;;  %v4831_v20 = vld [vmem:[%s6041_s5 + $0x1c0] sm:$0xff]  }
 0x131   : > { %4335 = vmatpush3.bf16.msra.mxu0 %v4808_v42  ;;  %4428 = vmatprep.subr.bf16.mxu1 %v4809_v43  ;;  %vm5705_vm9 = vmpackc.low %vm1220_vm14, %vm4911_vm7  ;;  %v4823_v42 = vld [vmem:[%s6041_s5 + $0x180] sm:$0xff]  }
 0x132   : > { %4336 = vmatprep.subr.bf16.mxu0 %v4810_v48  ;;  %vm1224_vm1 = vcmp.lt.s32.totalorder %v1042_v11, 15 }
 0x133   : > { %4413 = vmatmul.mubr.bf16.vlgmr.msra.gmra.mrb[0].mxu1 %v5269_v57  ;;  %4321 = vmatmul.mubr.msk.bf16.gmra.mrb[24].mxu0 %vm5317_vm12, %v5321_v17  ;;  %vm5729_vm8 = vmpackc.low %vm1224_vm1, %vm4911_vm7 }
 0x134   : > { %4429 = vmatpush3.bf16.msra.mxu1 %v4809_v43  ;;  %4416 = vmatprep.mubr.bf16.mxu1 %v5261_v51  ;;  %v798_v43 = vadd.s32 88, %v5131_v37 }
 0x135   : > { %4324 = vmatprep.mubr.msk.bf16.mxu0 %vm5410_vm15, %v5425_v52  ;;  %4337 = vmatpush3.bf16.msra.mxu0 %v4810_v48  ;;  %v800_v48 = vadd.s32 104, %v5131_v37 }
 0x136   : > { %4430 = vmatprep.subr.bf16.mxu1 %v4811_v9  ;;  %4338 = vmatprep.subr.bf16.mxu0 %v4812_v29 }
 0x138   : > { %4431 = vmatpush3.bf16.msra.mxu1 %v4811_v9 }
 0x139   : > { %4339 = vmatpush3.bf16.msra.mxu0 %v4812_v29  ;;  %4432 = vmatprep.subr.bf16.mxu1 %v4813_v34  ;;  %v4824_v29 = vld [vmem:[%s6041_s5 + $0x188] sm:$0xff]  }
 0x13a   : > { %4340 = vmatprep.subr.bf16.mxu0 %v4814_v39 }
 0x13b   : > { %4417 = vmatmul.mubr.bf16.gmra.mrb[4].mxu1 %v5373_v60  ;;  %4325 = vmatmul.mubr.msk.bf16.gmra.mrb[28].mxu0 %vm5430_vm3, %v5434_v18 }
 0x13c   : > { %4433 = vmatpush3.bf16.msra.mxu1 %v4813_v34  ;;  %4420 = vmatprep.mubr.bf16.mxu1 %v5361_v47  ;;  %v1056_v34 = vand.u32 15, %v798_v43 }
 0x13d   : > { %4328 = vmatprep.mubr.msk.bf16.mxu0 %vm5503_vm4, %v5515_v35  ;;  %4341 = vmatpush3.bf16.msra.mxu0 %v4814_v39  ;;  %v1070_v39 = vand.u32 15, %v800_v48 }
 0x13e   : > { %4434 = vmatprep.subr.bf16.mxu1 %v4815_v25  ;;  %4342 = vmatprep.subr.bf16.mxu0 %v4816_v22  ;;  %vm1226_vm14 = vcmp.lt.s32.totalorder %v1056_v34, 15 }
 0x140   : > { %4435 = vmatpush3.bf16.msra.mxu1 %v4815_v25  ;;  %v802_v25 = vadd.s32 120, %v5131_v37 }
 0x141   : > { %4343 = vmatpush3.bf16.msra.mxu0 %v4816_v22  ;;  %4436 = vmatprep.subr.bf16.mxu1 %v4817_v44  ;;  %v6092_v22 = vmov 0 }
 0x142   : > { %4344 = vmatprep.subr.bf16.mxu0 %v4818_v13 }
 0x143   : > { %4421 = vmatmul.mubr.bf16.gmra.mrb[8].mxu1 %v5476_v50  ;;  %4329 = vmatmul.mubr.msk.bf16.gmra.mrb[32].mxu0 %vm5520_vm6, %v5524_v10 }
 0x144   : > { %4437 = vmatpush3.bf16.msra.mxu1 %v4817_v44  ;;  %4424 = vmatprep.mubr.bf16.mxu1 %v5470_v32  ;;  %v4826_v44 = vld [vmem:[%s6041_s5 + $0x198] sm:$0xff]  }
 0x145   : > { %4345 = vmatpush3.bf16.msra.mxu0 %v4818_v13  ;;  %4348 = vmatprep.mubr.msk.bf16.mxu0 %vm3694_vm2, %v3695_v46  ;;  %v1028_v46 = vand.u32 15, %v794_v63  ;;  %v1084_v13 = vand.u32 15, %v802_v25  ;;  %v4830_v63 = vld [vmem:[%s6041_s5 + $0x1b8] sm:$0xff]  }
 0x146   : > { %4438 = vmatprep.subr.bf16.mxu1 %v4819_v56  ;;  %4346 = vmatprep.subr.bf16.mxu0 %v4820_v2 }
 0x147   : > { %vm1222_vm10 = vcmp.lt.s32.totalorder %v1028_v46, 15 }
 0x148   : > { %4439 = vmatpush3.bf16.msra.mxu1 %v4819_v56  ;;  %vm5724_vm2 = vmpackc.low %vm1222_vm10, %vm4911_vm7 }
 0x149   : > { %4347 = vmatpush3.bf16.msra.mxu0 %v4820_v2  ;;  %4440 = vmatprep.subr.bf16.mxu1 %v4821_v45  ;;  %vm5753_vm10 = vmpackc.low %vm1226_vm14, %vm4911_vm7  ;;  %vm1230_vm14 = vcmp.lt.s32.totalorder %v1084_v13, 15  ;;  %v4828_v2 = vld [vmem:[%s6041_s5 + $0x1a8] sm:$0xff]  }
 0x14a   : > { %v6093_v22 = vsel %vm5753_vm10, 4294967295, %v6092_v22  ;;  %4556 = vmatprep.subr.bf16.mxu0 %v4847_v5 }
 0x14b   : > { %4425 = vmatmul.mubr.bf16.gmra.mrb[12].mxu1 %v5567_v4 }
 0x14c   : > { %4441 = vmatpush3.bf16.msra.mxu1 %v4821_v45  ;;  %4349 = vmatmul.mubr.msk.bf16.vlgmr.msra.gmra.mrb[20].mxu0 %vm3697_vm5, %v5277_v59 }
 0x14d   : > { %4444 = vmatprep.mubr.msk.bf16.mxu1 %vm3697_vm5, %v5277_v59  ;;  %4352 = vmatprep.mubr.msk.bf16.mxu0 %vm5705_vm9, %v5347_v28  ;;  %vm1228_vm5 = vcmp.lt.s32.totalorder %v1070_v39, 15  ;;  %v5956_v59 = vld [vmem:[%s6042_s6] ss:$0 sm:$0xff] }
 0x14e   : > { %4442 = vmatprep.subr.bf16.mxu1 %v4822_v33  ;;  %vm5758_vm1 = vmpackc.low %vm1228_vm5, %vm4911_vm7  ;;  %4557 = vmatpush3.bf16.msra.mxu0 %v4847_v5 }
 0x14f   : > { %vm5782_vm5 = vmpackc.low %vm1230_vm14, %vm4911_vm7  ;;  %vm1232_vm14 = vcmp.lt.s32.totalorder %v1098_v12, 15 }
 0x150   : > { %4443 = vmatpush3.bf16.msra.mxu1 %v4822_v33  ;;  %v4832_v33 = vld [vmem:[%s6041_s5 + $0x1c8] sm:$0xff]  }
 0x151   : > { %4460 = vmatprep.subr.bf16.mxu1 %v4823_v42 }
 0x153   : > { %4445 = vmatmul.mubr.msk.bf16.vlgmr.msra.gmra.mrb[0].mxu1 %vm5705_vm9, %v5347_v28 }
 0x154   : > { %4461 = vmatpush3.bf16.msra.mxu1 %v4823_v42  ;;  %4353 = vmatmul.mubr.msk.bf16.gmra.mrb[24].mxu0 %vm5724_vm2, %v5442_v26 }
 0x155   : > { %4448 = vmatprep.mubr.msk.bf16.mxu1 %vm5724_vm2, %v5442_v26  ;;  %4356 = vmatprep.mubr.msk.bf16.mxu0 %vm5729_vm8, %v5463_v61 }
 0x156   : > { %4462 = vmatprep.subr.bf16.mxu1 %v4824_v29 }
 0x158   : > { %4463 = vmatpush3.bf16.msra.mxu1 %v4824_v29 }
 0x159   : > { %4464 = vmatprep.subr.bf16.mxu1 %v4825_v14 }
 0x15b   : > { %4449 = vmatmul.mubr.msk.bf16.gmra.mrb[4].mxu1 %vm5729_vm8, %v5463_v61 }
 0x15c   : > { %4465 = vmatpush3.bf16.msra.mxu1 %v4825_v14  ;;  %4357 = vmatmul.mubr.msk.bf16.gmra.mrb[28].mxu0 %vm5753_vm10, %v5531_v62 }
 0x15d   : > { %4452 = vmatprep.mubr.msk.bf16.mxu1 %vm5753_vm10, %v5531_v62  ;;  %4360 = vmatprep.mubr.msk.bf16.mxu0 %vm5758_vm1, %v5559_v54  ;;  %vm5802_vm10 = vmpackc.low %vm1232_vm14, %vm4911_vm7 }
 0x15e   : > { %4466 = vmatprep.subr.bf16.mxu1 %v4826_v44 }
 0x160   : > { %4467 = vmatpush3.bf16.msra.mxu1 %v4826_v44 }
 0x161   : > { %4468 = vmatprep.subr.bf16.mxu1 %v4827_v53 }
 0x163   : > { %4453 = vmatmul.mubr.msk.bf16.gmra.mrb[8].mxu1 %vm5758_vm1, %v5559_v54 }
 0x164   : > { %4469 = vmatpush3.bf16.msra.mxu1 %v4827_v53  ;;  %4361 = vmatmul.mubr.msk.bf16.gmra.mrb[32].mxu0 %vm5782_vm5, %v5569_v49 }
 0x165   : > { %4456 = vmatprep.mubr.msk.bf16.mxu1 %vm5782_vm5, %v5569_v49  ;;  %4470 = vmatprep.subr.bf16.mxu1 %v4828_v2 }
 0x168   : > { %4471 = vmatpush3.bf16.msra.mxu1 %v4828_v2 }
 0x169   : > { %4472 = vmatprep.subr.bf16.mxu1 %v4829_v8 }
 0x16b   : > { %4457 = vmatmul.mubr.msk.bf16.gmra.mrb[12].mxu1 %vm5802_vm10, %v5608_v3 }
 0x16c   : > { %4473 = vmatpush3.bf16.msra.mxu1 %v4829_v8  ;;  %4476 = vmatprep.mubr.msk.bf16.mxu1 %vm5300_vm11, %v5312_v7  ;;  %v4834_v7 = vld [vmem:[%s6041_s5 + $0x1d8] sm:$0xff]  }
 0x16d   : > { %4474 = vmatprep.subr.bf16.mxu1 %v4830_v63 }
 0x170   : > { %4475 = vmatpush3.bf16.msra.mxu1 %v4830_v63 }
 0x171   : > { %4492 = vmatprep.subr.bf16.mxu1 %v4831_v20 }
 0x173   : > { %4477 = vmatmul.mubr.msk.bf16.vlgmr.msra.gmra.mrb[0].mxu1 %vm5317_vm12, %v5321_v17  ;;  %v805_v17 = vadd.s32 144, %v5131_v37 }
 0x174   : > { %4493 = vmatpush3.bf16.msra.mxu1 %v4831_v20  ;;  %4480 = vmatprep.mubr.msk.bf16.mxu1 %vm5410_vm15, %v5425_v52  ;;  %vm3910_vm15 = vmpackc.low %vm5416_vm0, %vm5416_vm0  ;;  %vm6100_vm0 = vnez %v6093_v22 }
 0x175   : > { %4494 = vmatprep.subr.bf16.mxu1 %v4832_v33  ;;  %v1105_v52 = vand.u32 15, %v805_v17 }
 0x177   : > { %vm1354_vm11 = vcmp.gt.s32.totalorder %v1105_v52, 0 }
 0x178   : > { %4495 = vmatpush3.bf16.msra.mxu1 %v4832_v33  ;;  %vm3883_vm12 = vmpackc.low %vm4911_vm7, %vm1354_vm11 }
 0x179   : > { %4496 = vmatprep.subr.bf16.mxu1 %v4833_v6 }
 0x17b   : > { %4481 = vmatmul.mubr.msk.bf16.gmra.mrb[4].mxu1 %vm5430_vm3, %v5434_v18  ;;  %v4838_v18 = vld [vmem:[%s6041_s5 + $0x1f8] sm:$0xff]  }
 0x17c   : > { %4497 = vmatpush3.bf16.msra.mxu1 %v4833_v6  ;;  %4484 = vmatprep.mubr.msk.bf16.mxu1 %vm5503_vm4, %v5515_v35  ;;  %v4840_v35 = vld [vmem:[%s6041_s5 + $0x208] sm:$0xff]  }
 0x17d   : > { %4498 = vmatprep.subr.bf16.mxu1 %v4834_v7 }
 0x180   : > { %4499 = vmatpush3.bf16.msra.mxu1 %v4834_v7 }
 0x181   : > { %4500 = vmatprep.subr.bf16.mxu1 %v4835_v16 }
 0x183   : > { %4485 = vmatmul.mubr.msk.bf16.gmra.mrb[8].mxu1 %vm5520_vm6, %v5524_v10  ;;  %v4850_v10 = vld [vmem:[%s6043_s7 + $0x18] sm:$0xff]  }
 0x184   : > { %4501 = vmatpush3.bf16.msra.mxu1 %v4835_v16  ;;  %4488 = vmatprep.mubr.msk.bf16.mxu1 %vm5598_vm13, %v5606_v24 }
 0x185   : > { %4502 = vmatprep.subr.bf16.mxu1 %v4836_v40 }
 0x188   : > { %4503 = vmatpush3.bf16.msra.mxu1 %v4836_v40 }
 0x189   : > { %4504 = vmatprep.subr.bf16.mxu1 %v4837_v15 }
 0x18b   : > { %4489 = vmatmul.mubr.msk.bf16.gmra.mrb[12].mxu1 %vm3883_vm12, %v3884_v38 }
 0x18c   : > { %4505 = vmatpush3.bf16.msra.mxu1 %v4837_v15  ;;  %4508 = vmatprep.mubr.bf16.mxu1 %v5269_v57  ;;  %v4841_v57 = vld [vmem:[%s6041_s5 + $0x210] sm:$0xff]  }
 0x18d   : > { %4506 = vmatprep.subr.bf16.mxu1 %v4838_v18 }
 0x190   : > { %4507 = vmatpush3.bf16.msra.mxu1 %v4838_v18 }
 0x191   : > { %4524 = vmatprep.subr.bf16.mxu1 %v4839_v23 }
 0x193   : > { %4509 = vmatmul.mubr.bf16.vlgmr.msra.gmra.mrb[0].mxu1 %v5261_v51  ;;  %v4843_v51 = vld [vmem:[%s6041_s5 + $0x220] sm:$0xff]  }
 0x194   : > { %4525 = vmatpush3.bf16.msra.mxu1 %v4839_v23  ;;  %4512 = vmatprep.mubr.bf16.mxu1 %v5373_v60  ;;  %v4844_v60 = vld [vmem:[%s6041_s5 + $0x228] sm:$0xff]  }
 0x195   : > { %4526 = vmatprep.subr.bf16.mxu1 %v4840_v35 }
 0x198   : > { %4527 = vmatpush3.bf16.msra.mxu1 %v4840_v35 }
 0x199   : > { %4528 = vmatprep.subr.bf16.mxu1 %v4841_v57 }
 0x19b   : > { %4513 = vmatmul.mubr.bf16.gmra.mrb[4].mxu1 %v5361_v47  ;;  %v4845_v47 = vld [vmem:[%s6041_s5 + $0x230] sm:$0xff]  }
 0x19c   : > { %4529 = vmatpush3.bf16.msra.mxu1 %v4841_v57  ;;  %4516 = vmatprep.mubr.bf16.mxu1 %v5476_v50  ;;  %v4846_v50 = vld [vmem:[%s6041_s5 + $0x238] sm:$0xff]  }
 0x19d   : > { %4530 = vmatprep.subr.bf16.mxu1 %v4842_v55 }
 0x1a0   : > { %4531 = vmatpush3.bf16.msra.mxu1 %v4842_v55 }
 0x1a1   : > { %4532 = vmatprep.subr.bf16.mxu1 %v4843_v51 }
 0x1a3   : > { %4517 = vmatmul.mubr.bf16.gmra.mrb[8].mxu1 %v5470_v32  ;;  %v4848_v32 = vld [vmem:[%s6043_s7 + $0x8] sm:$0xff]  }
 0x1a4   : > { %4533 = vmatpush3.bf16.msra.mxu1 %v4843_v51  ;;  %4520 = vmatprep.mubr.bf16.mxu1 %v5567_v4 }
 0x1a5   : > { %4534 = vmatprep.subr.bf16.mxu1 %v4844_v60  ;;  %4558 = vmatprep.subr.bf16.mxu0 %v4848_v32 }
 0x1a6   : > { %4559 = vmatpush3.bf16.msra.mxu0 %v4848_v32 }
 0x1a8   : > { %4535 = vmatpush3.bf16.msra.mxu1 %v4844_v60 }
 0x1a9   : > { %4536 = vmatprep.subr.bf16.mxu1 %v4845_v47 }
 0x1ab   : > { %4521 = vmatmul.mubr.msk.bf16.gmra.mrb[12].mxu1 %vm3910_vm15, %v5554_v21  ;;  %v4853_v21 = vld [vmem:[%s6043_s7 + $0x30] sm:$0xff]  }
 0x1ac   : > { %4537 = vmatpush3.bf16.msra.mxu1 %v4845_v47  ;;  %4540 = vmatprep.mubr.msk.bf16.mxu1 %vm5705_vm9, %v5347_v28  ;;  %v806_v28 = vadd.s32 152, %v5131_v37  ;;  %v4851_v37 = vld [vmem:[%s6043_s7 + $0x20] sm:$0xff]  }
 0x1ad   : > { %4538 = vmatprep.subr.bf16.mxu1 %v4846_v50 }
 0x1b0   : > { %4539 = vmatpush3.bf16.msra.mxu1 %v4846_v50 }
 0x1b3   : > { %4541 = vmatmul.mubr.msk.bf16.vlgmr.msra.gmra.mrb[0].mxu1 %vm5724_vm2, %v5442_v26  ;;  %v4849_v26 = vld [vmem:[%s6043_s7 + $0x10] sm:$0xff]  }
 0x1b4   : > { %4544 = vmatprep.mubr.msk.bf16.mxu1 %vm5729_vm8, %v5463_v61  ;;  %v1112_v61 = vand.u32 15, %v806_v28  ;;  %4560 = vmatprep.subr.bf16.mxu0 %v4849_v26 }
 0x1b5   : > { %4561 = vmatpush3.bf16.msra.mxu0 %v4849_v26 }
 0x1b6   : > { %vm1234_vm3 = vcmp.lt.s32.totalorder %v1112_v61, 15  ;;  %4562 = vmatprep.subr.bf16.mxu0 %v4850_v10 }
 0x1b7   : > { %vm3958_vm4 = vmpackc.low %vm1234_vm3, %vm4911_vm7 }
 0x1b9   : > { %4563 = vmatpush3.bf16.msra.mxu0 %v4850_v10 }
 0x1ba   : > { %4564 = vmatprep.subr.bf16.mxu0 %v4851_v37 }
 0x1bb   : > { %4545 = vmatmul.mubr.msk.bf16.gmra.mrb[4].mxu1 %vm6100_vm0, %v5531_v62  ;;  %v4852_v62 = vld [vmem:[%s6043_s7 + $0x28] sm:$0xff]  }
 0x1bc   : > { %4548 = vmatprep.mubr.msk.bf16.mxu1 %vm5758_vm1, %v5559_v54  ;;  %v4854_v54 = vld [vmem:[%s6043_s7 + $0x38] sm:$0xff]  }
 0x1bd   : > { %4565 = vmatpush3.bf16.msra.mxu0 %v4851_v37 }
 0x1be   : > { %4566 = vmatprep.subr.bf16.mxu0 %v4852_v62 }
 0x1c1   : > { %4567 = vmatpush3.bf16.msra.mxu0 %v4852_v62 }
 0x1c2   : > { %4568 = vmatprep.subr.bf16.mxu0 %v4853_v21 }
 0x1c3   : > { %4549 = vmatmul.mubr.msk.bf16.gmra.mrb[8].mxu1 %vm5782_vm5, %v5569_v49 }
 0x1c4   : > { %4552 = vmatprep.mubr.msk.bf16.mxu1 %vm5802_vm10, %v5608_v3 }
 0x1c5   : > { %4569 = vmatpush3.bf16.msra.mxu0 %v4853_v21 }
 0x1c6   : > { %4570 = vmatprep.subr.bf16.mxu0 %v4854_v54 }
 0x1c9   : > { %4571 = vmatpush3.bf16.msra.mxu0 %v4854_v54 }
 0x1cb   : > { %4553 = vmatmul.mubr.msk.bf16.gmra.mrb[12].mxu1 %vm3958_vm4, %v3959_v1 }
 0x21f   : > { %v4350_v4 = vpop.f32.mrb[20].mxu0 }
 0x220   : > { %v1909_v49 = vpop.f32.mrb[21].mxu0 }
 0x221   : > { %v4351_v41 = vpop.f32.mrb[22].mxu0 }
 0x222   : > { %v1912_v0 = vpop.f32.mrb[23].mxu0 }
 0x227   : > { %v4354_v27 = vpop.f32.mrb[24].mxu0 }
 0x228   : > { %v1925_v58 = vpop.f32.mrb[25].mxu0 }
 0x229   : > { %v4355_v24 = vpop.f32.mrb[26].mxu0 }
 0x22a   : > { %v1928_v3 = vpop.f32.mrb[27].mxu0 }
 0x22f   : > { %v4358_v30 = vpop.f32.mrb[28].mxu0 }
 0x230   : > { %v1941_v1 = vpop.f32.mrb[29].mxu0 }
 0x231   : > { %v4359_v38 = vpop.f32.mrb[30].mxu0 }
 0x232   : > { %v1944_v36 = vpop.f32.mrb[31].mxu0 }
 0x237   : > { %v4362_v46 = vpop.f32.mrb[32].mxu0 }
 0x238   : > { %v5947_v11 = vpop.f32.mrb[33].mxu0 }
 0x239   : > { %v5949_v42 = vpop.f32.mrb[34].mxu0 }
 0x23a   : > { %v5951_v43 = vpop.f32.mrb[35].mxu0 }
 0x286   : > { %v4542_v48 = vpop.f32.mrb[0].mxu1 }
 0x287   : > { %v4588_v9 = vadd.f32 %v4542_v48, %v4350_v4  ;;  %v2977_v29 = vpop.f32.mrb[1].mxu1 }
 0x288   : > { %v4589_v34 = vadd.f32 %v2977_v29, %v1909_v49  ;;  %v4543_v39 = vpop.f32.mrb[2].mxu1 }
 0x289   : > { %v3065_v14 = vadd.f32 %v4588_v9, %v5956_v59  ;;  %v4590_v25 = vadd.f32 %v4543_v39, %v4351_v41  ;;  %v2980_v22 = vpop.f32.mrb[3].mxu1 }
 0x28a   : > { %v3063_v31 = vadd.f32 %v4589_v34, %v5956_v59  ;;  %v4591_v44 = vadd.f32 %v2980_v22, %v1912_v0 }
 0x28b   : > { %v3066_v13 = vadd.f32 %v4590_v25, %v5956_v59  ;;  %v3081_v19 = vmax.f32 %v3065_v14, 0.0 }
 0x28c   : > { %v3064_v53 = vadd.f32 %v4591_v44, %v5956_v59  ;;  %v3079_v2 = vmax.f32 %v3063_v31, 0.0 }
 0x28d   : > { %v3082_v56 = vmax.f32 %v3066_v13, 0.0 }
 0x28e   : > { %v3080_v12 = vmax.f32 %v3064_v53, 0.0  ;;  %v4546_v8 = vpop.f32.mrb[4].mxu1 }
 0x28f   : > { %v3096_v45 = vpack.c.bf16 %v3082_v56, %v3081_v19  ;;  %v4592_v63 = vadd.f32 %v4546_v8, %v4354_v27  ;;  %v2993_v20 = vpop.f32.mrb[5].mxu1  ;;  %v4863_v19 = vld [vmem:[%s5054_s24 + $0x8] sm:$0xff]  }
 0x290   : > { %v4593_v33 = vadd.f32 %v2993_v20, %v1925_v58  ;;  %v4547_v6 = vpop.f32.mrb[6].mxu1  ;;  %v3095_v7 = vpack.c.bf16 %v3080_v12, %v3079_v2  ;;  %v3289_v56 = vunpack.c.l.bf16 %v4863_v19  ;;  %v4864_v12 = vld [vmem:[%s5054_s24] sm:$0xff]  }
 0x291   : > { %v3069_v16 = vadd.f32 %v4592_v63, %v5956_v59  ;;  %v4594_v17 = vadd.f32 %v4547_v6, %v4355_v24  ;;  %v2996_v40 = vpop.f32.mrb[7].mxu1  ;;  %v3287_v8 = vunpack.c.l.bf16 %v4864_v12 }
 0x292   : > { %v3067_v52 = vadd.f32 %v4593_v33, %v5956_v59  ;;  %v4595_v15 = vadd.f32 %v2996_v40, %v1928_v3  ;;  %4572 = vmatprep.mubr.bf16.mxu0 %v3095_v7  ;;  %v3290_v33 = vunpack.c.h.bf16 %v4863_v19 }
 0x293   : > { %v3070_v18 = vadd.f32 %v4594_v17, %v5956_v59  ;;  %4573 = vmatmul.mubr.bf16.vlgmr.msra.gmra.mrb[36].mxu0 %v3096_v45  ;;  %v3085_v35 = vmax.f32 %v3069_v16, 0.0  ;;  %v3288_v17 = vunpack.c.h.bf16 %v4864_v12 }
 0x294   : > { %v3068_v23 = vadd.f32 %v4595_v15, %v5956_v59  ;;  %v3083_v55 = vmax.f32 %v3067_v52, 0.0 }
 0x295   : > { %v3086_v57 = vmax.f32 %v3070_v18, 0.0 }
 0x296   : > { %v3084_v51 = vmax.f32 %v3068_v23, 0.0  ;;  %v4550_v60 = vpop.f32.mrb[8].mxu1 }
 0x297   : > { %v4596_v47 = vadd.f32 %v4550_v60, %v4358_v30  ;;  %v3009_v50 = vpop.f32.mrb[9].mxu1  ;;  %v3098_v5 = vpack.c.bf16 %v3086_v57, %v3085_v35 }
 0x298   : > { %v4597_v32 = vadd.f32 %v3009_v50, %v1941_v1  ;;  %v4551_v28 = vpop.f32.mrb[10].mxu1  ;;  %v3097_v26 = vpack.c.bf16 %v3084_v51, %v3083_v55 }
 0x299   : > { %v3073_v61 = vadd.f32 %v4596_v47, %v5956_v59  ;;  %v4598_v10 = vadd.f32 %v4551_v28, %v4359_v38  ;;  %v3012_v37 = vpop.f32.mrb[11].mxu1  ;;  %v4865_v47 = vld [vmem:[%s5054_s24 + $0x18] sm:$0xff]  }
 0x29a   : > { %v3071_v62 = vadd.f32 %v4597_v32, %v5956_v59  ;;  %v4599_v21 = vadd.f32 %v3012_v37, %v1944_v36  ;;  %4576 = vmatprep.mubr.bf16.mxu0 %v3097_v26  ;;  %v3293_v50 = vunpack.c.l.bf16 %v4865_v47 }
 0x29b   : > { %v3074_v54 = vadd.f32 %v4598_v10, %v5956_v59  ;;  %4577 = vmatmul.mubr.bf16.gmra.mrb[40].mxu0 %v3098_v5  ;;  %v3089_v49 = vmax.f32 %v3073_v61, 0.0  ;;  %v4866_v61 = vld [vmem:[%s5054_s24 + $0x10] sm:$0xff]  }
 0x29c   : > { %v3072_v4 = vadd.f32 %v4599_v21, %v5956_v59  ;;  %v3087_v0 = vmax.f32 %v3071_v62, 0.0  ;;  %v3291_v10 = vunpack.c.l.bf16 %v4866_v61 }
 0x29d   : > { %v3090_v41 = vmax.f32 %v3074_v54, 0.0 }
 0x29e   : > { %v3088_v27 = vmax.f32 %v3072_v4, 0.0  ;;  %v4554_v58 = vpop.f32.mrb[12].mxu1  ;;  %v3294_v4 = vunpack.c.h.bf16 %v4865_v47 }
 0x29f   : > { %v4600_v24 = vadd.f32 %v4554_v58, %v4362_v46  ;;  %v3025_v3 = vpop.f32.mrb[13].mxu1  ;;  %v3100_v30 = vpack.c.bf16 %v3090_v41, %v3089_v49  ;;  %v3292_v58 = vunpack.c.h.bf16 %v4866_v61 }
 0x2a0   : > { %v4601_v1 = vadd.f32 %v3025_v3, %v5947_v11  ;;  %v4555_v38 = vpop.f32.mrb[14].mxu1  ;;  %v3099_v48 = vpack.c.bf16 %v3088_v27, %v3087_v0 }
 0x2a1   : > { %v3077_v36 = vadd.f32 %v4600_v24, %v5956_v59  ;;  %v4602_v9 = vadd.f32 %v4555_v38, %v5949_v42  ;;  %v3028_v29 = vpop.f32.mrb[15].mxu1  ;;  %v5980_v42 = vld [vmem:[%s6044_s8] ss:$0 sm:$0xff] }
 0x2a2   : > { %v3075_v34 = vadd.f32 %v4601_v1, %v5956_v59  ;;  %v4603_v39 = vadd.f32 %v3028_v29, %v5951_v43  ;;  %4580 = vmatprep.mubr.bf16.mxu0 %v3099_v48 }
 0x2a3   : > { %v3078_v14 = vadd.f32 %v4602_v9, %v5956_v59  ;;  %4581 = vmatmul.mubr.bf16.gmra.mrb[44].mxu0 %v3100_v30  ;;  %v3093_v11 = vmax.f32 %v3077_v36, 0.0 }
 0x2a4   : > { %v3076_v46 = vadd.f32 %v4603_v39, %v5956_v59  ;;  %v3091_v22 = vmax.f32 %v3075_v34, 0.0  ;;  %v4867_v39 = vld [vmem:[%s5054_s24 + $0x28] sm:$0xff]  }
 0x2a5   : > { %v3094_v25 = vmax.f32 %v3078_v14, 0.0  ;;  %v3297_v14 = vunpack.c.l.bf16 %v4867_v39 }
 0x2a6   : > { %v3092_v31 = vmax.f32 %v3076_v46, 0.0 }
 0x2a7   : > { %v3102_v44 = vpack.c.bf16 %v3094_v25, %v3093_v11 }
 0x2a8   : > { %v3101_v13 = vpack.c.bf16 %v3092_v31, %v3091_v22  ;;  %v4868_v31 = vld [vmem:[%s5054_s24 + $0x20] sm:$0xff]  }
 0x2aa   : > { %4584 = vmatprep.mubr.bf16.mxu0 %v3101_v13 }
 0x2ab   : > { %4585 = vmatmul.mubr.bf16.gmra.mrb[48].mxu0 %v3102_v44  ;;  %v3295_v44 = vunpack.c.l.bf16 %v4868_v31 }
 0x366   : > { %v4574_v43 = vpop.f32.mrb[36].mxu0 }
 0x367   : > { %v3217_v53 = vadd.f32 %v4574_v43, %v5980_v42  ;;  %v3208_v59 = vpop.f32.mrb[37].mxu0 }
 0x368   : > { %v3209_v2 = vadd.f32 %v5980_v42, %v3208_v59  ;;  %v4575_v45 = vpop.f32.mrb[38].mxu0 }
 0x369   : > { %v3273_v63 = vmax.f32 %v3217_v53, 0.0  ;;  %v3220_v20 = vadd.f32 %v4575_v45, %v5980_v42  ;;  %v3211_v6 = vpop.f32.mrb[39].mxu0  ;;  %v3296_v45 = vunpack.c.h.bf16 %v4868_v31 }
 0x36a   : > { %v3271_v7 = vmax.f32 %v3209_v2, 0.0  ;;  %v3212_v16 = vadd.f32 %v5980_v42, %v3211_v6 }
 0x36b   : > { %v3305_v40 = vadd.f32 %v3289_v56, %v3273_v63  ;;  %v3274_v52 = vmax.f32 %v3220_v20, 0.0  ;;  %v3298_v56 = vunpack.c.h.bf16 %v4867_v39 }
 0x36c   : > { %v3303_v15 = vadd.f32 %v3287_v8, %v3271_v7  ;;  %v3272_v18 = vmax.f32 %v3212_v16, 0.0 }
 0x36d   : > { %v3306_v23 = vadd.f32 %v3290_v33, %v3274_v52  ;;  %v3321_v55 = vmax.f32 %v3305_v40, 0.0 }
 0x36e   : > { %v3304_v35 = vadd.f32 %v3288_v17, %v3272_v18  ;;  %v4578_v57 = vpop.f32.mrb[40].mxu0  ;;  %v3319_v32 = vmax.f32 %v3303_v15, 0.0  ;;  %v4869_v18 = vld [vmem:[%s5054_s24 + $0x38] sm:$0xff]  }
 0x36f   : > { %v3322_v51 = vmax.f32 %v3306_v23, 0.0  ;;  %v3233_v60 = vadd.f32 %v4578_v57, %v5980_v42  ;;  %v3224_v5 = vpop.f32.mrb[41].mxu0  ;;  %v3301_v23 = vunpack.c.l.bf16 %v4869_v18 }
 0x370   : > { %v3320_v28 = vmax.f32 %v3304_v35, 0.0  ;;  %v3225_v26 = vadd.f32 %v5980_v42, %v3224_v5  ;;  %v4579_v37 = vpop.f32.mrb[42].mxu0 }
 0x371   : > { %v4015_v62 = vpack.c.bf16 %v3322_v51, %v3321_v55  ;;  %v3277_v21 = vmax.f32 %v3233_v60, 0.0  ;;  %v3236_v54 = vadd.f32 %v4579_v37, %v5980_v42  ;;  %v3227_v49 = vpop.f32.mrb[43].mxu0  ;;  %v4870_v60 = vld [vmem:[%s5054_s24 + $0x30] sm:$0xff]  }
 0x372   : > { %v4010_v41 = vpack.c.bf16 %v3320_v28, %v3319_v32  ;;  %v3275_v0 = vmax.f32 %v3225_v26, 0.0  ;;  %v3228_v27 = vadd.f32 %v5980_v42, %v3227_v49  ;;  %v3299_v47 = vunpack.c.l.bf16 %v4870_v60 }
 0x373   : > { %4047 = vst [vmem:[%s5995_s27 + $0x8] sm:$0xff] %v4015_v62   ;;  %v3309_v24 = vadd.f32 %v3293_v50, %v3277_v21  ;;  %v3278_v3 = vmax.f32 %v3236_v54, 0.0  ;;  %v3302_v26 = vunpack.c.h.bf16 %v4869_v18  ;;  %v3300_v21 = vunpack.c.h.bf16 %v4870_v60 }
 0x374   : > { %4011 = vst [vmem:[%s5995_s27] sm:$0xff] %v4010_v41   ;;  %v3307_v30 = vadd.f32 %v3291_v10, %v3275_v0  ;;  %v3276_v1 = vmax.f32 %v3228_v27, 0.0 }
 0x375   : > { %v3310_v38 = vadd.f32 %v3294_v4, %v3278_v3  ;;  %v3325_v9 = vmax.f32 %v3309_v24, 0.0 }
 0x376   : > { %v3308_v48 = vadd.f32 %v3292_v58, %v3276_v1  ;;  %v4582_v36 = vpop.f32.mrb[44].mxu0  ;;  %v3323_v11 = vmax.f32 %v3307_v30, 0.0 }
 0x377   : > { %v3326_v29 = vmax.f32 %v3310_v38, 0.0  ;;  %v3249_v34 = vadd.f32 %v4582_v36, %v5980_v42  ;;  %v3240_v46 = vpop.f32.mrb[45].mxu0 }
 0x378   : > { %v3324_v25 = vmax.f32 %v3308_v48, 0.0  ;;  %v3241_v22 = vadd.f32 %v5980_v42, %v3240_v46  ;;  %v4583_v13 = vpop.f32.mrb[46].mxu0 }
 0x379   : > { %v4025_v43 = vpack.c.bf16 %v3326_v29, %v3325_v9  ;;  %v3281_v53 = vmax.f32 %v3249_v34, 0.0  ;;  %v3252_v19 = vadd.f32 %v4583_v13, %v5980_v42  ;;  %v3243_v59 = vpop.f32.mrb[47].mxu0 }
 0x37a   : > { %v4020_v2 = vpack.c.bf16 %v3324_v25, %v3323_v11  ;;  %v3279_v12 = vmax.f32 %v3241_v22, 0.0  ;;  %v3244_v8 = vadd.f32 %v5980_v42, %v3243_v59 }
 0x37b   : > { %4049 = vst [vmem:[%s5995_s27 + $0x18] sm:$0xff] %v4025_v43   ;;  %v3313_v63 = vadd.f32 %v3297_v14, %v3281_v53  ;;  %v3282_v20 = vmax.f32 %v3252_v19, 0.0 }
 0x37c   : > { %4048 = vst [vmem:[%s5995_s27 + $0x10] sm:$0xff] %v4020_v2   ;;  %v3311_v33 = vadd.f32 %v3295_v44, %v3279_v12  ;;  %v3280_v6 = vmax.f32 %v3244_v8, 0.0 }
 0x37d   : > { %v3314_v7 = vadd.f32 %v3298_v56, %v3282_v20  ;;  %v3329_v40 = vmax.f32 %v3313_v63, 0.0 }
 0x37e   : > { %v3312_v16 = vadd.f32 %v3296_v45, %v3280_v6  ;;  %v4586_v17 = vpop.f32.mrb[48].mxu0  ;;  %v3327_v57 = vmax.f32 %v3311_v33, 0.0 }
 0x37f   : > { %v3330_v52 = vmax.f32 %v3314_v7, 0.0  ;;  %v3265_v15 = vadd.f32 %v4586_v17, %v5980_v42  ;;  %v3256_v35 = vpop.f32.mrb[49].mxu0 }
 0x380   : > { %v3328_v55 = vmax.f32 %v3312_v16, 0.0  ;;  %v3257_v51 = vadd.f32 %v5980_v42, %v3256_v35  ;;  %v4587_v50 = vpop.f32.mrb[50].mxu0 }
 0x381   : > { %v4035_v5 = vpack.c.bf16 %v3330_v52, %v3329_v40  ;;  %v3285_v32 = vmax.f32 %v3265_v15, 0.0  ;;  %v3268_v28 = vadd.f32 %v4587_v50, %v5980_v42  ;;  %v3259_v61 = vpop.f32.mrb[51].mxu0 }
 0x382   : > { %v4030_v10 = vpack.c.bf16 %v3328_v55, %v3327_v57  ;;  %v3283_v37 = vmax.f32 %v3257_v51, 0.0  ;;  %v3260_v62 = vadd.f32 %v5980_v42, %v3259_v61 }
 0x383   : > { %4051 = vst [vmem:[%s5995_s27 + $0x28] sm:$0xff] %v4035_v5   ;;  %v3317_v54 = vadd.f32 %v3301_v23, %v3285_v32  ;;  %v3286_v4 = vmax.f32 %v3268_v28, 0.0 }
 0x384   : > { %4050 = vst [vmem:[%s5995_s27 + $0x20] sm:$0xff] %v4030_v10   ;;  %v3315_v49 = vadd.f32 %v3299_v47, %v3283_v37  ;;  %v3284_v41 = vmax.f32 %v3260_v62, 0.0 }
 0x385   : > { %v3318_v0 = vadd.f32 %v3302_v26, %v3286_v4  ;;  %v3333_v58 = vmax.f32 %v3317_v54, 0.0 }
 0x386   : > { %v3316_v27 = vadd.f32 %v3300_v21, %v3284_v41  ;;  %v3331_v3 = vmax.f32 %v3315_v49, 0.0 }
 0x387   : > { %v3334_v24 = vmax.f32 %v3318_v0, 0.0 }
 0x388   : > { %v3332_v30 = vmax.f32 %v3316_v27, 0.0 }
 0x389   : > { %v4045_v1 = vpack.c.bf16 %v3334_v24, %v3333_v58 }
 0x38a   : > { %v4040_v38 = vpack.c.bf16 %v3332_v30, %v3331_v3 }
 0x38b   : > { %4053 = vst [vmem:[%s5995_s27 + $0x38] sm:$0xff] %v4045_v1  }
 0x38c   : > { %4052 = vst [vmem:[%s5995_s27 + $0x30] sm:$0xff] %v4040_v38  }
 0x38d PF: > { %s19_s13 = sadd.s32 1, %s4909_s13   ;;  %s6101_s30 = smov %s4901_s11 }
 0x38e   : > { %p16_p12 = scmp.ge.s32.totalorder %s19_s13, 6   ;;  %s6102_s10 = smov %s4905_s12 }
 0x38f   : > { %s6103_s11 = smov %s6106_s14  ;;  %s6104_s12 = smov %s6110_s15 }
 0x390   :  { %18 = sbr.rel (!%p16_p12) target bundleno = 3 (0x3), region = 100 }

</bundles_post_ra>
